<compile_context>
chip_gen: v7x
topology: tpu7x:2x2x1
jax: 0.10.0
libtpu: 0.0.40
codegen_flags: <defaults>
</compile_context>

<pallas_src>
import functools
import math

import jax
import jax.numpy as jnp
from jax import lax
from jax.experimental import pallas as pl
from jax.experimental.pallas import tpu as pltpu

COMPUTE_DTYPE = jnp.bfloat16   # MXU operand dtype; accumulation / stats stay f32
MASK_VALUE = -1e30             # large finite negative (avoids -inf NaN traps)


def _tile(dim, target, align):
    """Largest block <= target that divides `dim` and is `align`-aligned
    (falls back to the full dim, which Pallas always accepts)."""
    if dim <= target:
        return dim
    t = (target // align) * align
    while t >= align:
        if dim % t == 0:
            return t
        t -= align
    return dim


def _head_group(head_num, dim_k, lane_target=128):
    """Largest divisor Hb of head_num with Hb*dim_k <= lane_target.

    Groups heads per attention block so the output store slab is Hb*dk lanes
    wide (lane-dense when Hb*dk hits 128; full-D at the small demo size)."""
    hb = 1
    for cand in range(1, head_num + 1):
        if head_num % cand == 0 and cand * dim_k <= lane_target:
            hb = cand
    return hb


# ---------------------------------------------------------------------------
# Dense projection kernel: out = x @ w + b
# (bf16 MXU operands, f32 VMEM accumulator over a tiled K axis)
# ---------------------------------------------------------------------------
def _linear_kernel(x_ref, w_ref, b_ref, o_ref, acc_ref):
    @pl.when(pl.program_id(2) == 0)
    def _init():
        acc_ref[...] = jnp.zeros_like(acc_ref)

    acc_ref[...] += jnp.dot(x_ref[...], w_ref[...],
                            preferred_element_type=jnp.float32)

    @pl.when(pl.program_id(2) == pl.num_programs(2) - 1)
    def _finalize():
        o_ref[...] = (acc_ref[...] + b_ref[...]).astype(o_ref.dtype)


def _linear(x, w, b, *, out_dtype):
    M, K = x.shape
    K2, N = w.shape
    assert K == K2 and b.shape == (1, N)
    tm = _tile(M, 256, 8)
    tn = _tile(N, 512, 128)
    tk = _tile(K, 512, 128)   # K-axis tiling keeps VMEM bounded on v5e/v7x
    grid = (M // tm, N // tn, K // tk)
    cost = pl.CostEstimate(
        flops=2 * M * N * K,
        transcendentals=0,
        bytes_accessed=2 * (M * K + K * N + M * N) + 4 * N,
    )
    return pl.pallas_call(
        _linear_kernel,
        out_shape=jax.ShapeDtypeStruct((M, N), out_dtype),
        grid_spec=pltpu.PrefetchScalarGridSpec(
            num_scalar_prefetch=0,
            grid=grid,
            in_specs=[
                pl.BlockSpec((tm, tk), lambda i, j, k: (i, k)),
                pl.BlockSpec((tk, tn), lambda i, j, k: (k, j)),
                pl.BlockSpec((1, tn), lambda i, j, k: (0, j)),
            ],
            out_specs=pl.BlockSpec((tm, tn), lambda i, j, k: (i, j)),
            scratch_shapes=[pltpu.VMEM((tm, tn), jnp.float32)],
        ),
        compiler_params=pltpu.CompilerParams(
            dimension_semantics=("parallel", "parallel", "arbitrary")),
        cost_estimate=cost,
    )(x, w, b)


# ---------------------------------------------------------------------------
# Flash-style causal attention kernel
#   grid = (B, head_groups, triangular_steps); online softmax in f32 scratch
# ---------------------------------------------------------------------------
def _flash_kernel(i_tbl, j_tbl, q_ref, k_ref, v_ref, o_ref,
                  m_ref, l_ref, acc_ref, *, sm_scale, tq, tk, hb, dk):
    t = pl.program_id(2)
    i = i_tbl[t]   # query block index
    j = j_tbl[t]   # kv block index (j <= i by construction of the tables)

    @pl.when(j == 0)
    def _init():
        m_ref[...] = jnp.full_like(m_ref, MASK_VALUE)
        l_ref[...] = jnp.zeros_like(l_ref)
        acc_ref[...] = jnp.zeros_like(acc_ref)

    def _update(on_diag):
        # (tq, hb, dk) -> (hb, tq, dk): tiny in-VMEM relayout so both matmuls
        # are batch-leading einsums (the documented MXU-friendly form).
        q = jnp.swapaxes(q_ref[...], 0, 1) * sm_scale   # scale q, not scores
        k = jnp.swapaxes(k_ref[...], 0, 1)
        v = jnp.swapaxes(v_ref[...], 0, 1)
        s = jnp.einsum('hqd,hkd->hqk', q, k,
                       preferred_element_type=jnp.float32)   # (hb, tq, tk)
        if on_diag:
            # Causal mask only on the diagonal block (requires tq == tk).
            row = lax.broadcasted_iota(jnp.int32, (tq, tk), 0)
            col = lax.broadcasted_iota(jnp.int32, (tq, tk), 1)
            s = jnp.where((row >= col)[None, :, :], s, MASK_VALUE)

        m_prev = m_ref[...]
        m_new = jnp.maximum(m_prev, jnp.max(s, axis=-1, keepdims=True))
        alpha = jnp.exp(m_prev - m_new)
        p = jnp.exp(s - m_new)
        l_ref[...] = alpha * l_ref[...] + jnp.sum(p, axis=-1, keepdims=True)
        acc_ref[...] = alpha * acc_ref[...] + jnp.einsum(
            'hqk,hkd->hqd', p.astype(v.dtype), v,
            preferred_element_type=jnp.float32)
        m_ref[...] = m_new

        if on_diag:
            # Diagonal block is the last contribution for query block i:
            # normalize and write straight into the (tq, hb*dk) output slab.
            inv_l = pl.reciprocal(l_ref[...], approx=True)    # (hb, tq, 1)
            for h in range(hb):
                o_ref[:, h * dk:(h + 1) * dk] = (
                    acc_ref[h] * inv_l[h]).astype(o_ref.dtype)

    @pl.when(j < i)
    def _off_diagonal():      # fully visible block: no mask built at all
        _update(on_diag=False)

    @pl.when(j == i)
    def _diagonal():          # masked block + finalize
        _update(on_diag=True)


def _flash_attention(qkv, *, head_num, dim_k):
    """qkv: (B, S, 3, H, dk) bf16 (a free reshape of the fused QKV projection).
    Returns the attention context directly in (B, S, D) layout."""
    B, S, three, H, dk = qkv.shape
    assert three == 3 and H == head_num and dk == dim_k
    D = H * dk
    hb = _head_group(H, dk)       # heads per block
    G = H // hb
    tq = _tile(S, 128, 8)
    tk = tq                       # diag skip/finalize logic assumes tq == tk
    nq = S // tq

    # Flattened lower-triangular grid: flat step t -> (i, j) with j <= i.
    ii, jj = [], []
    for qi in range(nq):
        for kj in range(qi + 1):
            ii.append(qi)
            jj.append(kj)
    steps = len(ii)               # nq * (nq + 1) // 2
    i_tbl = jnp.asarray(ii, dtype=jnp.int32)
    j_tbl = jnp.asarray(jj, dtype=jnp.int32)

    sm_scale = 1.0 / math.sqrt(dk)
    kernel = functools.partial(_flash_kernel, sm_scale=sm_scale,
                               tq=tq, tk=tk, hb=hb, dk=dk)
    cost = pl.CostEstimate(
        flops=2 * B * H * S * S * dk,            # QK^T + PV over the causal half
        transcendentals=B * H * S * S // 2 + B * H * S,
        bytes_accessed=2 * 4 * B * S * D,        # read q,k,v + write out (bf16)
    )
    return pl.pallas_call(
        kernel,
        out_shape=jax.ShapeDtypeStruct((B, S, D), qkv.dtype),
        grid_spec=pltpu.PrefetchScalarGridSpec(
            num_scalar_prefetch=2,
            grid=(B, G, steps),
            in_specs=[
                pl.BlockSpec((None, tq, None, hb, dk),
                             lambda b, g, t, it, jt: (b, it[t], 0, g, 0)),
                pl.BlockSpec((None, tk, None, hb, dk),
                             lambda b, g, t, it, jt: (b, jt[t], 1, g, 0)),
                pl.BlockSpec((None, tk, None, hb, dk),
                             lambda b, g, t, it, jt: (b, jt[t], 2, g, 0)),
            ],
            out_specs=pl.BlockSpec((None, tq, hb * dk),
                                   lambda b, g, t, it, jt: (b, it[t], g)),
            scratch_shapes=[
                pltpu.VMEM((hb, tq, 1), jnp.float32),    # running max
                pltpu.VMEM((hb, tq, 1), jnp.float32),    # running denominator
                pltpu.VMEM((hb, tq, dk), jnp.float32),   # output accumulator
            ],
        ),
        compiler_params=pltpu.CompilerParams(
            dimension_semantics=("parallel", "parallel", "arbitrary")),
        cost_estimate=cost,
    )(i_tbl, j_tbl, qkv, qkv, qkv)


# ---------------------------------------------------------------------------
# Parameter fusion (once, OUTSIDE the jitted forward)
# ---------------------------------------------------------------------------
def prepare_params(params):
    """Fuse [Wq|Wk|Wv] and pre-cast weights to bf16 once, so the per-call
    forward reads no f32 weights and writes no temporary copies to HBM."""
    w_qkv = jnp.concatenate([params["wq"], params["wk"], params["wv"]], axis=1)
    b_qkv = jnp.concatenate([params["bq"], params["bk"], params["bv"]], axis=1)
    return {
        "w_qkv": w_qkv.astype(COMPUTE_DTYPE),
        "b_qkv": b_qkv.astype(jnp.float32),
        "wo": params["wo"].astype(COMPUTE_DTYPE),
        "bo": params["bo"].astype(jnp.float32),
    }


# ---------------------------------------------------------------------------
# Full forward pass
# ---------------------------------------------------------------------------
@functools.partial(jax.jit, static_argnames=("head_num",))
def self_attention(x, fused_params, *, head_num):
    """x: (B, S, D) float32. fused_params: output of prepare_params()."""
    B, S, D = x.shape
    assert D % head_num == 0
    dk = D // head_num

    x2d = x.reshape(B * S, D).astype(COMPUTE_DTYPE)
    qkv = _linear(x2d, fused_params["w_qkv"], fused_params["b_qkv"],
                  out_dtype=COMPUTE_DTYPE)                       # (B*S, 3D)

    # Free reshape (no transpose): (B*S, 3D) -> (B, S, 3, H, dk).
    qkv = qkv.reshape(B, S, 3, head_num, dk)
    ctx = _flash_attention(qkv, head_num=head_num, dim_k=dk)     # (B, S, D)

    out = _linear(ctx.reshape(B * S, D), fused_params["wo"],
                  fused_params["bo"], out_dtype=x.dtype)
    return out.reshape(B, S, D)


# ---------------------------------------------------------------------------
# Plain-JAX reference (mirrors the PyTorch forward, eval mode, f32)
# ---------------------------------------------------------------------------
def reference_self_attention(x, params, *, head_num):
    B, S, D = x.shape
    dk = D // head_num

    def proj(w, b):
        return x @ w + b[0]

    q = proj(params["wq"], params["bq"]).reshape(B, S, head_num, dk).transpose(0, 2, 1, 3)
    k = proj(params["wk"], params["bk"]).reshape(B, S, head_num, dk).transpose(0, 2, 1, 3)
    v = proj(params["wv"], params["bv"]).reshape(B, S, head_num, dk).transpose(0, 2, 1, 3)

    sim = jnp.einsum('bhqd,bhkd->bhqk', q, k) / jnp.sqrt(float(dk))
    mask = jnp.tril(jnp.ones((S, S), dtype=bool))[None, None]
    sim = jnp.where(mask, sim, -jnp.inf)
    p = jax.nn.softmax(sim, axis=-1)
    ctx = jnp.einsum('bhqk,bhkd->bhqd', p, v).transpose(0, 2, 1, 3).reshape(B, S, D)
    return ctx @ params["wo"] + params["bo"][0]


def init_params(key, dim_model):
    """Deterministic synthetic parameter init (shapes per nn.Linear(D, D))."""
    ks = jax.random.split(key, 8)
    s = 1.0 / (dim_model ** 0.5)
    def w(k): return jax.random.uniform(k, (dim_model, dim_model), jnp.float32, -s, s)
    def b(k): return jax.random.uniform(k, (1, dim_model), jnp.float32, -s, s)
    return {
        "wq": w(ks[0]), "bq": b(ks[1]),
        "wk": w(ks[2]), "bk": b(ks[3]),
        "wv": w(ks[4]), "bv": b(ks[5]),
        "wo": w(ks[6]), "bo": b(ks[7]),
    }


if __name__ == "__main__":
    # config: dim_model=32, head_num=4 (dim_k=8), block_size >= seq, batch=2, seq=8
    B, S, D, H = 2, 8, 32, 4

    key = jax.random.PRNGKey(0)
    k_x, k_p = jax.random.split(key)
    x = jax.random.normal(k_x, (B, S, D), dtype=jnp.float32)
    params = init_params(k_p, D)
    fused = prepare_params(params)     # weight fusion + bf16 cast, once, un-jitted

    out = self_attention(x, fused, head_num=H)
    out = jax.block_until_ready(out)

    ref = reference_self_attention(x, params, head_num=H)
    assert out.shape == (B, S, D)
    max_err = float(jnp.max(jnp.abs(out - ref)))
    # bf16 MXU operands + approx reciprocal => loose-ish tolerance vs f32 ref
    assert jnp.allclose(out, ref, atol=2e-2, rtol=2e-2), f"max abs err {max_err}"

    print("KERNEL_OK")
</pallas_src>

<mosaic_0001>
module attributes {stable_mosaic.version = 11 : i64} {
  func.func @_linear_kernel(%arg0: i32, %arg1: i32, %arg2: i32, %arg3: memref<16x32xbf16, #tpu.memory_space<vmem>>, %arg4: memref<32x96xbf16, #tpu.memory_space<vmem>>, %arg5: memref<1x96xf32, #tpu.memory_space<vmem>>, %arg6: memref<16x96xbf16, #tpu.memory_space<vmem>>, %arg7: memref<16x96xf32, #tpu.memory_space<vmem>>) attributes {dimension_semantics = [#tpu.dimension_semantics<parallel>, #tpu.dimension_semantics<parallel>, #tpu.dimension_semantics<arbitrary>], iteration_bounds = array<i64: 1, 1, 1>, scalar_prefetch = 0 : i64, scratch_operands = 1 : i64, tpu.core_type = #tpu.core_type<tc>, window_params = [{transform_indices = @transform_0, window_bounds = array<i64: 16, 32>}, {transform_indices = @transform_1, window_bounds = array<i64: 32, 96>}, {transform_indices = @transform_2, window_bounds = array<i64: 1, 96>}, {transform_indices = @transform_3, window_bounds = array<i64: 16, 96>}]} {
    %c0_i32 = arith.constant 0 : i32
    %0 = arith.cmpi eq, %arg2, %c0_i32 : i32
    %1 = arith.extui %0 : i1 to i32
    %c0_i32_0 = arith.constant 0 : i32
    %2 = arith.cmpi ne, %1, %c0_i32_0 : i32
    scf.if %2 {
      %cst_10 = arith.constant 0.000000e+00 : f32
      %12 = vector.broadcast %cst_10 : f32 to vector<16x96xf32>
      %c0_11 = arith.constant 0 : index
      %c0_12 = arith.constant 0 : index
      %13 = vector.load %arg7[%c0_11, %c0_12] : memref<16x96xf32, #tpu.memory_space<vmem>>, vector<16x96xf32>
      tpu.vector_store %arg7[%c0_11, %c0_12], %12 {strides = array<i32>} : memref<16x96xf32, #tpu.memory_space<vmem>>, vector<16x96xf32>,
    } else {
    }
    %c0 = arith.constant 0 : index
    %c0_1 = arith.constant 0 : index
    %3 = vector.load %arg7[%c0, %c0_1] : memref<16x96xf32, #tpu.memory_space<vmem>>, vector<16x96xf32>
    %c0_2 = arith.constant 0 : index
    %c0_3 = arith.constant 0 : index
    %4 = vector.load %arg3[%c0_2, %c0_3] : memref<16x32xbf16, #tpu.memory_space<vmem>>, vector<16x32xbf16>
    %c0_4 = arith.constant 0 : index
    %c0_5 = arith.constant 0 : index
    %5 = vector.load %arg4[%c0_4, %c0_5] : memref<32x96xbf16, #tpu.memory_space<vmem>>, vector<32x96xbf16>
    %cst = arith.constant dense<0.000000e+00> : vector<16x96xf32>
    %6 = tpu.matmul %4, %5, %cst {dimension_numbers = #tpu.dot_dimension_numbers<[1], [0], [0], [1], [0, 0, 1, 1], [], []>} : vector<16x32xbf16>, vector<32x96xbf16>, vector<16x96xf32> -> vector<16x96xf32>
    %7 = arith.addf %3, %6 : vector<16x96xf32>
    %c0_6 = arith.constant 0 : index
    %c0_7 = arith.constant 0 : index
    %8 = vector.load %arg7[%c0_6, %c0_7] : memref<16x96xf32, #tpu.memory_space<vmem>>, vector<16x96xf32>
    tpu.vector_store %arg7[%c0_6, %c0_7], %7 {strides = array<i32>} : memref<16x96xf32, #tpu.memory_space<vmem>>, vector<16x96xf32>,
    %c0_i32_8 = arith.constant 0 : i32
    %9 = arith.cmpi eq, %arg2, %c0_i32_8 : i32
    %10 = arith.extui %9 : i1 to i32
    %c0_i32_9 = arith.constant 0 : i32
    %11 = arith.cmpi ne, %10, %c0_i32_9 : i32
    scf.if %11 {
      %c0_10 = arith.constant 0 : index
      %c0_11 = arith.constant 0 : index
      %12 = vector.load %arg7[%c0_10, %c0_11] : memref<16x96xf32, #tpu.memory_space<vmem>>, vector<16x96xf32>
      %c0_12 = arith.constant 0 : index
      %c0_13 = arith.constant 0 : index
      %13 = vector.load %arg5[%c0_12, %c0_13] : memref<1x96xf32, #tpu.memory_space<vmem>>, vector<1x96xf32>
      %14 = vector.broadcast %13 : vector<1x96xf32> to vector<16x96xf32>
      %15 = arith.addf %12, %14 : vector<16x96xf32>
      %16 = arith.truncf %15 : vector<16x96xf32> to vector<16x96xbf16>
      %c0_14 = arith.constant 0 : index
      %c0_15 = arith.constant 0 : index
      %17 = vector.load %arg6[%c0_14, %c0_15] : memref<16x96xbf16, #tpu.memory_space<vmem>>, vector<16x96xbf16>
      tpu.vector_store %arg6[%c0_14, %c0_15], %16 {strides = array<i32>} : memref<16x96xbf16, #tpu.memory_space<vmem>>, vector<16x96xbf16>,
    } else {
    }
    return
  }
  func.func @transform_0(%arg0: i32, %arg1: i32, %arg2: i32) -> (i32, i32) {
    %c0_i32 = arith.constant 0 : i32
    return %arg0, %arg2 : i32, i32
  }
  func.func @transform_1(%arg0: i32, %arg1: i32, %arg2: i32) -> (i32, i32) {
    %c0_i32 = arith.constant 0 : i32
    return %arg2, %arg1 : i32, i32
  }
  func.func @transform_2(%arg0: i32, %arg1: i32, %arg2: i32) -> (i32, i32) {
    %c0_i32 = arith.constant 0 : i32
    %c0_i32_0 = arith.constant 0 : i32
    return %c0_i32, %arg1 : i32, i32
  }
  func.func @transform_3(%arg0: i32, %arg1: i32, %arg2: i32) -> (i32, i32) {
    %c0_i32 = arith.constant 0 : i32
    return %arg0, %arg1 : i32, i32
  }
}

module attributes {stable_mosaic.version = 11 : i64} {
  func.func @_flash_kernel(%arg0: i32, %arg1: i32, %arg2: i32, %arg3: memref<1xi32, #tpu.memory_space<smem>>, %arg4: memref<1xi32, #tpu.memory_space<smem>>, %arg5: memref<1x8x1x4x8xbf16, #tpu.memory_space<vmem>>, %arg6: memref<1x8x1x4x8xbf16, #tpu.memory_space<vmem>>, %arg7: memref<1x8x1x4x8xbf16, #tpu.memory_space<vmem>>, %arg8: memref<1x8x32xbf16, #tpu.memory_space<vmem>>, %arg9: memref<4x8x1xf32, #tpu.memory_space<vmem>>, %arg10: memref<4x8x1xf32, #tpu.memory_space<vmem>>, %arg11: memref<4x8x8xf32, #tpu.memory_space<vmem>>) attributes {dimension_semantics = [#tpu.dimension_semantics<parallel>, #tpu.dimension_semantics<parallel>, #tpu.dimension_semantics<arbitrary>], iteration_bounds = array<i64: 2, 1, 1>, scalar_prefetch = 2 : i64, scratch_operands = 3 : i64, tpu.core_type = #tpu.core_type<tc>, window_params = [{transform_indices = @transform_0, window_bounds = array<i64: 1, 8, 1, 4, 8>}, {transform_indices = @transform_1, window_bounds = array<i64: 1, 8, 1, 4, 8>}, {transform_indices = @transform_2, window_bounds = array<i64: 1, 8, 1, 4, 8>}, {transform_indices = @transform_3, window_bounds = array<i64: 1, 8, 32>}]} {
    %0 = arith.index_cast %arg2 : i32 to index
    %1 = memref.load %arg3[%0] : memref<1xi32, #tpu.memory_space<smem>>
    %2 = arith.index_cast %arg2 : i32 to index
    %3 = memref.load %arg4[%2] : memref<1xi32, #tpu.memory_space<smem>>
    %c0_i32 = arith.constant 0 : i32
    %4 = arith.cmpi eq, %3, %c0_i32 : i32
    %5 = arith.extui %4 : i1 to i32
    %c0_i32_0 = arith.constant 0 : i32
    %6 = arith.cmpi ne, %5, %c0_i32_0 : i32
    scf.if %6 {
      %cst = arith.constant -1.000000e+30 : f32
      %13 = vector.broadcast %cst : f32 to vector<4x8x1xf32>
      %c0 = arith.constant 0 : index
      %c0_3 = arith.constant 0 : index
      %c0_4 = arith.constant 0 : index
      %14 = vector.load %arg9[%c0, %c0_3, %c0_4] : memref<4x8x1xf32, #tpu.memory_space<vmem>>, vector<4x8x1xf32>
      tpu.vector_store %arg9[%c0, %c0_3, %c0_4], %13 {strides = array<i32>} : memref<4x8x1xf32, #tpu.memory_space<vmem>>, vector<4x8x1xf32>,
      %cst_5 = arith.constant 0.000000e+00 : f32
      %15 = vector.broadcast %cst_5 : f32 to vector<4x8x1xf32>
      %c0_6 = arith.constant 0 : index
      %c0_7 = arith.constant 0 : index
      %c0_8 = arith.constant 0 : index
      %16 = vector.load %arg10[%c0_6, %c0_7, %c0_8] : memref<4x8x1xf32, #tpu.memory_space<vmem>>, vector<4x8x1xf32>
      tpu.vector_store %arg10[%c0_6, %c0_7, %c0_8], %15 {strides = array<i32>} : memref<4x8x1xf32, #tpu.memory_space<vmem>>, vector<4x8x1xf32>,
      %cst_9 = arith.constant 0.000000e+00 : f32
      %17 = vector.broadcast %cst_9 : f32 to vector<4x8x8xf32>
      %c0_10 = arith.constant 0 : index
      %c0_11 = arith.constant 0 : index
      %c0_12 = arith.constant 0 : index
      %18 = vector.load %arg11[%c0_10, %c0_11, %c0_12] : memref<4x8x8xf32, #tpu.memory_space<vmem>>, vector<4x8x8xf32>
      tpu.vector_store %arg11[%c0_10, %c0_11, %c0_12], %17 {strides = array<i32>} : memref<4x8x8xf32, #tpu.memory_space<vmem>>, vector<4x8x8xf32>,
    } else {
    }
    %7 = arith.cmpi slt, %3, %1 : i32
    %8 = arith.extui %7 : i1 to i32
    %c0_i32_1 = arith.constant 0 : i32
    %9 = arith.cmpi ne, %8, %c0_i32_1 : i32
    scf.if %9 {
      %c0 = arith.constant 0 : index
      %c0_3 = arith.constant 0 : index
      %c0_4 = arith.constant 0 : index
      %c0_5 = arith.constant 0 : index
      %c0_6 = arith.constant 0 : index
      %13 = vector.load %arg5[%c0, %c0_3, %c0_4, %c0_5, %c0_6] : memref<1x8x1x4x8xbf16, #tpu.memory_space<vmem>>, vector<1x8x1x4x8xbf16>
      %14 = vector.shape_cast %13 : vector<1x8x1x4x8xbf16> to vector<8x4x8xbf16>
      %15 = tpu.transpose %14, [1, 0, 2] : vector<8x4x8xbf16> -> vector<4x8x8xbf16>
      %cst = arith.constant 3.535160e-01 : bf16
      %16 = vector.broadcast %cst : bf16 to vector<4x8x8xbf16>
      %17 = arith.mulf %15, %16 : vector<4x8x8xbf16>
      %c0_7 = arith.constant 0 : index
      %c0_8 = arith.constant 0 : index
      %c0_9 = arith.constant 0 : index
      %c0_10 = arith.constant 0 : index
      %c0_11 = arith.constant 0 : index
      %18 = vector.load %arg6[%c0_7, %c0_8, %c0_9, %c0_10, %c0_11] : memref<1x8x1x4x8xbf16, #tpu.memory_space<vmem>>, vector<1x8x1x4x8xbf16>
      %19 = vector.shape_cast %18 : vector<1x8x1x4x8xbf16> to vector<8x4x8xbf16>
      %20 = tpu.transpose %19, [1, 0, 2] : vector<8x4x8xbf16> -> vector<4x8x8xbf16>
      %c0_12 = arith.constant 0 : index
      %c0_13 = arith.constant 0 : index
      %c0_14 = arith.constant 0 : index
      %c0_15 = arith.constant 0 : index
      %c0_16 = arith.constant 0 : index
      %21 = vector.load %arg7[%c0_12, %c0_13, %c0_14, %c0_15, %c0_16] : memref<1x8x1x4x8xbf16, #tpu.memory_space<vmem>>, vector<1x8x1x4x8xbf16>
      %22 = vector.shape_cast %21 : vector<1x8x1x4x8xbf16> to vector<8x4x8xbf16>
      %23 = tpu.transpose %22, [1, 0, 2] : vector<8x4x8xbf16> -> vector<4x8x8xbf16>
      "tpu.trace_start"() <{level = 10 : i32, message = "hqd,hkd->hqk"}> : () -> ()
      %cst_17 = arith.constant dense<0.000000e+00> : vector<4x8x8xf32>
      %24 = tpu.matmul %17, %20, %cst_17 {dimension_numbers = #tpu.dot_dimension_numbers<[2], [2], [1], [1], [0, 0, 0, 1, 1, 1], [0], [0]>} : vector<4x8x8xbf16>, vector<4x8x8xbf16>, vector<4x8x8xf32> -> vector<4x8x8xf32>
      "tpu.trace_stop"() : () -> ()
      %c0_18 = arith.constant 0 : index
      %c0_19 = arith.constant 0 : index
      %c0_20 = arith.constant 0 : index
      %25 = vector.load %arg9[%c0_18, %c0_19, %c0_20] : memref<4x8x1xf32, #tpu.memory_space<vmem>>, vector<4x8x1xf32>
      %cst_21 = arith.constant dense<0xFF800000> : vector<4x8xf32>
      %26 = vector.multi_reduction <maximumf>, %24, %cst_21 [2] : vector<4x8x8xf32> to vector<4x8xf32>
      %27 = vector.shape_cast %26 : vector<4x8xf32> to vector<4x8x1xf32>
      %28 = arith.maximumf %25, %27 : vector<4x8x1xf32>
      %29 = arith.subf %25, %28 : vector<4x8x1xf32>
      %30 = math.exp %29 : vector<4x8x1xf32>
      %31 = vector.broadcast %28 : vector<4x8x1xf32> to vector<4x8x8xf32>
      %32 = arith.subf %24, %31 : vector<4x8x8xf32>
      %33 = math.exp %32 : vector<4x8x8xf32>
      %c0_22 = arith.constant 0 : index
      %c0_23 = arith.constant 0 : index
      %c0_24 = arith.constant 0 : index
      %34 = vector.load %arg10[%c0_22, %c0_23, %c0_24] : memref<4x8x1xf32, #tpu.memory_space<vmem>>, vector<4x8x1xf32>
      %35 = arith.mulf %30, %34 : vector<4x8x1xf32>
      %cst_25 = arith.constant dense<0.000000e+00> : vector<4x8xf32>
      %36 = vector.multi_reduction <add>, %33, %cst_25 [2] : vector<4x8x8xf32> to vector<4x8xf32>
      %37 = vector.shape_cast %36 : vector<4x8xf32> to vector<4x8x1xf32>
      %38 = arith.addf %35, %37 : vector<4x8x1xf32>
      %c0_26 = arith.constant 0 : index
      %c0_27 = arith.constant 0 : index
      %c0_28 = arith.constant 0 : index
      %39 = vector.load %arg10[%c0_26, %c0_27, %c0_28] : memref<4x8x1xf32, #tpu.memory_space<vmem>>, vector<4x8x1xf32>
      tpu.vector_store %arg10[%c0_26, %c0_27, %c0_28], %38 {strides = array<i32>} : memref<4x8x1xf32, #tpu.memory_space<vmem>>, vector<4x8x1xf32>,
      %c0_29 = arith.constant 0 : index
      %c0_30 = arith.constant 0 : index
      %c0_31 = arith.constant 0 : index
      %40 = vector.load %arg11[%c0_29, %c0_30, %c0_31] : memref<4x8x8xf32, #tpu.memory_space<vmem>>, vector<4x8x8xf32>
      %41 = vector.broadcast %30 : vector<4x8x1xf32> to vector<4x8x8xf32>
      %42 = arith.mulf %41, %40 : vector<4x8x8xf32>
      %43 = arith.truncf %33 : vector<4x8x8xf32> to vector<4x8x8xbf16>
      "tpu.trace_start"() <{level = 10 : i32, message = "hqk,hkd->hqd"}> : () -> ()
      %cst_32 = arith.constant dense<0.000000e+00> : vector<4x8x8xf32>
      %44 = tpu.matmul %43, %23, %cst_32 {dimension_numbers = #tpu.dot_dimension_numbers<[2], [1], [1], [2], [0, 0, 0, 1, 1, 2], [0], [0]>} : vector<4x8x8xbf16>, vector<4x8x8xbf16>, vector<4x8x8xf32> -> vector<4x8x8xf32>
      "tpu.trace_stop"() : () -> ()
      %45 = arith.addf %42, %44 : vector<4x8x8xf32>
      %c0_33 = arith.constant 0 : index
      %c0_34 = arith.constant 0 : index
      %c0_35 = arith.constant 0 : index
      %46 = vector.load %arg11[%c0_33, %c0_34, %c0_35] : memref<4x8x8xf32, #tpu.memory_space<vmem>>, vector<4x8x8xf32>
      tpu.vector_store %arg11[%c0_33, %c0_34, %c0_35], %45 {strides = array<i32>} : memref<4x8x8xf32, #tpu.memory_space<vmem>>, vector<4x8x8xf32>,
      %c0_36 = arith.constant 0 : index
      %c0_37 = arith.constant 0 : index
      %c0_38 = arith.constant 0 : index
      %47 = vector.load %arg9[%c0_36, %c0_37, %c0_38] : memref<4x8x1xf32, #tpu.memory_space<vmem>>, vector<4x8x1xf32>
      tpu.vector_store %arg9[%c0_36, %c0_37, %c0_38], %28 {strides = array<i32>} : memref<4x8x1xf32, #tpu.memory_space<vmem>>, vector<4x8x1xf32>,
    } else {
    }
    %10 = arith.cmpi eq, %3, %1 : i32
    %11 = arith.extui %10 : i1 to i32
    %c0_i32_2 = arith.constant 0 : i32
    %12 = arith.cmpi ne, %11, %c0_i32_2 : i32
    scf.if %12 {
      %c0 = arith.constant 0 : index
      %c0_3 = arith.constant 0 : index
      %c0_4 = arith.constant 0 : index
      %c0_5 = arith.constant 0 : index
      %c0_6 = arith.constant 0 : index
      %13 = vector.load %arg5[%c0, %c0_3, %c0_4, %c0_5, %c0_6] : memref<1x8x1x4x8xbf16, #tpu.memory_space<vmem>>, vector<1x8x1x4x8xbf16>
      %14 = vector.shape_cast %13 : vector<1x8x1x4x8xbf16> to vector<8x4x8xbf16>
      %15 = tpu.transpose %14, [1, 0, 2] : vector<8x4x8xbf16> -> vector<4x8x8xbf16>
      %cst = arith.constant 3.535160e-01 : bf16
      %16 = vector.broadcast %cst : bf16 to vector<4x8x8xbf16>
      %17 = arith.mulf %15, %16 : vector<4x8x8xbf16>
      %c0_7 = arith.constant 0 : index
      %c0_8 = arith.constant 0 : index
      %c0_9 = arith.constant 0 : index
      %c0_10 = arith.constant 0 : index
      %c0_11 = arith.constant 0 : index
      %18 = vector.load %arg6[%c0_7, %c0_8, %c0_9, %c0_10, %c0_11] : memref<1x8x1x4x8xbf16, #tpu.memory_space<vmem>>, vector<1x8x1x4x8xbf16>
      %19 = vector.shape_cast %18 : vector<1x8x1x4x8xbf16> to vector<8x4x8xbf16>
      %20 = tpu.transpose %19, [1, 0, 2] : vector<8x4x8xbf16> -> vector<4x8x8xbf16>
      %c0_12 = arith.constant 0 : index
      %c0_13 = arith.constant 0 : index
      %c0_14 = arith.constant 0 : index
      %c0_15 = arith.constant 0 : index
      %c0_16 = arith.constant 0 : index
      %21 = vector.load %arg7[%c0_12, %c0_13, %c0_14, %c0_15, %c0_16] : memref<1x8x1x4x8xbf16, #tpu.memory_space<vmem>>, vector<1x8x1x4x8xbf16>
      %22 = vector.shape_cast %21 : vector<1x8x1x4x8xbf16> to vector<8x4x8xbf16>
      %23 = tpu.transpose %22, [1, 0, 2] : vector<8x4x8xbf16> -> vector<4x8x8xbf16>
      "tpu.trace_start"() <{level = 10 : i32, message = "hqd,hkd->hqk"}> : () -> ()
      %cst_17 = arith.constant dense<0.000000e+00> : vector<4x8x8xf32>
      %24 = tpu.matmul %17, %20, %cst_17 {dimension_numbers = #tpu.dot_dimension_numbers<[2], [2], [1], [1], [0, 0, 0, 1, 1, 1], [0], [0]>} : vector<4x8x8xbf16>, vector<4x8x8xbf16>, vector<4x8x8xf32> -> vector<4x8x8xf32>
      "tpu.trace_stop"() : () -> ()
      %25 = tpu.iota {dimensions = array<i32: 0>} : vector<8x8xi32>
      %26 = tpu.iota {dimensions = array<i32: 1>} : vector<8x8xi32>
      %27 = arith.cmpi sge, %25, %26 : vector<8x8xi32>
      %28 = vector.shape_cast %27 : vector<8x8xi1> to vector<1x8x8xi1>
      %cst_18 = arith.constant -1.000000e+30 : f32
      %29 = vector.shape_cast %28 : vector<1x8x8xi1> to vector<1x8x8xi1>
      %30 = vector.broadcast %29 : vector<1x8x8xi1> to vector<4x8x8xi1>
      %31 = vector.broadcast %cst_18 : f32 to vector<4x8x8xf32>
      %32 = arith.select %30, %24, %31 : vector<4x8x8xi1>, vector<4x8x8xf32>
      %c0_19 = arith.constant 0 : index
      %c0_20 = arith.constant 0 : index
      %c0_21 = arith.constant 0 : index
      %33 = vector.load %arg9[%c0_19, %c0_20, %c0_21] : memref<4x8x1xf32, #tpu.memory_space<vmem>>, vector<4x8x1xf32>
      %cst_22 = arith.constant dense<0xFF800000> : vector<4x8xf32>
      %34 = vector.multi_reduction <maximumf>, %32, %cst_22 [2] : vector<4x8x8xf32> to vector<4x8xf32>
      %35 = vector.shape_cast %34 : vector<4x8xf32> to vector<4x8x1xf32>
      %36 = arith.maximumf %33, %35 : vector<4x8x1xf32>
      %37 = arith.subf %33, %36 : vector<4x8x1xf32>
      %38 = math.exp %37 : vector<4x8x1xf32>
      %39 = vector.broadcast %36 : vector<4x8x1xf32> to vector<4x8x8xf32>
      %40 = arith.subf %32, %39 : vector<4x8x8xf32>
      %41 = math.exp %40 : vector<4x8x8xf32>
      %c0_23 = arith.constant 0 : index
      %c0_24 = arith.constant 0 : index
      %c0_25 = arith.constant 0 : index
      %42 = vector.load %arg10[%c0_23, %c0_24, %c0_25] : memref<4x8x1xf32, #tpu.memory_space<vmem>>, vector<4x8x1xf32>
      %43 = arith.mulf %38, %42 : vector<4x8x1xf32>
      %cst_26 = arith.constant dense<0.000000e+00> : vector<4x8xf32>
      %44 = vector.multi_reduction <add>, %41, %cst_26 [2] : vector<4x8x8xf32> to vector<4x8xf32>
      %45 = vector.shape_cast %44 : vector<4x8xf32> to vector<4x8x1xf32>
      %46 = arith.addf %43, %45 : vector<4x8x1xf32>
      %c0_27 = arith.constant 0 : index
      %c0_28 = arith.constant 0 : index
      %c0_29 = arith.constant 0 : index
      %47 = vector.load %arg10[%c0_27, %c0_28, %c0_29] : memref<4x8x1xf32, #tpu.memory_space<vmem>>, vector<4x8x1xf32>
      tpu.vector_store %arg10[%c0_27, %c0_28, %c0_29], %46 {strides = array<i32>} : memref<4x8x1xf32, #tpu.memory_space<vmem>>, vector<4x8x1xf32>,
      %c0_30 = arith.constant 0 : index
      %c0_31 = arith.constant 0 : index
      %c0_32 = arith.constant 0 : index
      %48 = vector.load %arg11[%c0_30, %c0_31, %c0_32] : memref<4x8x8xf32, #tpu.memory_space<vmem>>, vector<4x8x8xf32>
      %49 = vector.broadcast %38 : vector<4x8x1xf32> to vector<4x8x8xf32>
      %50 = arith.mulf %49, %48 : vector<4x8x8xf32>
      %51 = arith.truncf %41 : vector<4x8x8xf32> to vector<4x8x8xbf16>
      "tpu.trace_start"() <{level = 10 : i32, message = "hqk,hkd->hqd"}> : () -> ()
      %cst_33 = arith.constant dense<0.000000e+00> : vector<4x8x8xf32>
      %52 = tpu.matmul %51, %23, %cst_33 {dimension_numbers = #tpu.dot_dimension_numbers<[2], [1], [1], [2], [0, 0, 0, 1, 1, 2], [0], [0]>} : vector<4x8x8xbf16>, vector<4x8x8xbf16>, vector<4x8x8xf32> -> vector<4x8x8xf32>
      "tpu.trace_stop"() : () -> ()
      %53 = arith.addf %50, %52 : vector<4x8x8xf32>
      %c0_34 = arith.constant 0 : index
      %c0_35 = arith.constant 0 : index
      %c0_36 = arith.constant 0 : index
      %54 = vector.load %arg11[%c0_34, %c0_35, %c0_36] : memref<4x8x8xf32, #tpu.memory_space<vmem>>, vector<4x8x8xf32>
      tpu.vector_store %arg11[%c0_34, %c0_35, %c0_36], %53 {strides = array<i32>} : memref<4x8x8xf32, #tpu.memory_space<vmem>>, vector<4x8x8xf32>,
      %c0_37 = arith.constant 0 : index
      %c0_38 = arith.constant 0 : index
      %c0_39 = arith.constant 0 : index
      %55 = vector.load %arg9[%c0_37, %c0_38, %c0_39] : memref<4x8x1xf32, #tpu.memory_space<vmem>>, vector<4x8x1xf32>
      tpu.vector_store %arg9[%c0_37, %c0_38, %c0_39], %36 {strides = array<i32>} : memref<4x8x1xf32, #tpu.memory_space<vmem>>, vector<4x8x1xf32>,
      %c0_40 = arith.constant 0 : index
      %c0_41 = arith.constant 0 : index
      %c0_42 = arith.constant 0 : index
      %56 = vector.load %arg10[%c0_40, %c0_41, %c0_42] : memref<4x8x1xf32, #tpu.memory_space<vmem>>, vector<4x8x1xf32>
      %57 = tpu.reciprocal %56 {approx = true} : vector<4x8x1xf32> -> vector<4x8x1xf32>
      %c0_43 = arith.constant 0 : index
      %c0_44 = arith.constant 0 : index
      %c0_45 = arith.constant 0 : index
      %58 = vector.load %arg11[%c0_43, %c0_44, %c0_45] : memref<4x8x8xf32, #tpu.memory_space<vmem>>, vector<1x8x8xf32>
      %59 = vector.shape_cast %58 : vector<1x8x8xf32> to vector<8x8xf32>
      %60 = vector.extract_strided_slice %57 {offsets = [0, 0, 0], sizes = [1, 8, 1], strides = [1, 1, 1]} : vector<4x8x1xf32> to vector<1x8x1xf32>
      %61 = vector.shape_cast %60 : vector<1x8x1xf32> to vector<8x1xf32>
      %62 = vector.broadcast %61 : vector<8x1xf32> to vector<8x8xf32>
      %63 = arith.mulf %59, %62 : vector<8x8xf32>
      %64 = arith.truncf %63 : vector<8x8xf32> to vector<8x8xbf16>
      %c0_46 = arith.constant 0 : index
      %c0_47 = arith.constant 0 : index
      %c0_48 = arith.constant 0 : index
      %65 = vector.load %arg8[%c0_46, %c0_47, %c0_48] : memref<1x8x32xbf16, #tpu.memory_space<vmem>>, vector<1x8x8xbf16>
      %66 = vector.shape_cast %65 : vector<1x8x8xbf16> to vector<8x8xbf16>
      %67 = vector.shape_cast %64 : vector<8x8xbf16> to vector<1x8x8xbf16>
      tpu.vector_store %arg8[%c0_46, %c0_47, %c0_48], %67 {strides = array<i32>} : memref<1x8x32xbf16, #tpu.memory_space<vmem>>, vector<1x8x8xbf16>,
      %c1 = arith.constant 1 : index
      %c0_49 = arith.constant 0 : index
      %c0_50 = arith.constant 0 : index
      %68 = vector.load %arg11[%c1, %c0_49, %c0_50] : memref<4x8x8xf32, #tpu.memory_space<vmem>>, vector<1x8x8xf32>
      %69 = vector.shape_cast %68 : vector<1x8x8xf32> to vector<8x8xf32>
      %70 = vector.extract_strided_slice %57 {offsets = [1, 0, 0], sizes = [1, 8, 1], strides = [1, 1, 1]} : vector<4x8x1xf32> to vector<1x8x1xf32>
      %71 = vector.shape_cast %70 : vector<1x8x1xf32> to vector<8x1xf32>
      %72 = vector.broadcast %71 : vector<8x1xf32> to vector<8x8xf32>
      %73 = arith.mulf %69, %72 : vector<8x8xf32>
      %74 = arith.truncf %73 : vector<8x8xf32> to vector<8x8xbf16>
      %c0_51 = arith.constant 0 : index
      %c0_52 = arith.constant 0 : index
      %c8 = arith.constant 8 : index
      %75 = vector.load %arg8[%c0_51, %c0_52, %c8] : memref<1x8x32xbf16, #tpu.memory_space<vmem>>, vector<1x8x8xbf16>
      %76 = vector.shape_cast %75 : vector<1x8x8xbf16> to vector<8x8xbf16>
      %77 = vector.shape_cast %74 : vector<8x8xbf16> to vector<1x8x8xbf16>
      tpu.vector_store %arg8[%c0_51, %c0_52, %c8], %77 {strides = array<i32>} : memref<1x8x32xbf16, #tpu.memory_space<vmem>>, vector<1x8x8xbf16>,
      %c2 = arith.constant 2 : index
      %c0_53 = arith.constant 0 : index
      %c0_54 = arith.constant 0 : index
      %78 = vector.load %arg11[%c2, %c0_53, %c0_54] : memref<4x8x8xf32, #tpu.memory_space<vmem>>, vector<1x8x8xf32>
      %79 = vector.shape_cast %78 : vector<1x8x8xf32> to vector<8x8xf32>
      %80 = vector.extract_strided_slice %57 {offsets = [2, 0, 0], sizes = [1, 8, 1], strides = [1, 1, 1]} : vector<4x8x1xf32> to vector<1x8x1xf32>
      %81 = vector.shape_cast %80 : vector<1x8x1xf32> to vector<8x1xf32>
      %82 = vector.broadcast %81 : vector<8x1xf32> to vector<8x8xf32>
      %83 = arith.mulf %79, %82 : vector<8x8xf32>
      %84 = arith.truncf %83 : vector<8x8xf32> to vector<8x8xbf16>
      %c0_55 = arith.constant 0 : index
      %c0_56 = arith.constant 0 : index
      %c16 = arith.constant 16 : index
      %85 = vector.load %arg8[%c0_55, %c0_56, %c16] : memref<1x8x32xbf16, #tpu.memory_space<vmem>>, vector<1x8x8xbf16>
      %86 = vector.shape_cast %85 : vector<1x8x8xbf16> to vector<8x8xbf16>
      %87 = vector.shape_cast %84 : vector<8x8xbf16> to vector<1x8x8xbf16>
      tpu.vector_store %arg8[%c0_55, %c0_56, %c16], %87 {strides = array<i32>} : memref<1x8x32xbf16, #tpu.memory_space<vmem>>, vector<1x8x8xbf16>,
      %c3 = arith.constant 3 : index
      %c0_57 = arith.constant 0 : index
      %c0_58 = arith.constant 0 : index
      %88 = vector.load %arg11[%c3, %c0_57, %c0_58] : memref<4x8x8xf32, #tpu.memory_space<vmem>>, vector<1x8x8xf32>
      %89 = vector.shape_cast %88 : vector<1x8x8xf32> to vector<8x8xf32>
      %90 = vector.extract_strided_slice %57 {offsets = [3, 0, 0], sizes = [1, 8, 1], strides = [1, 1, 1]} : vector<4x8x1xf32> to vector<1x8x1xf32>
      %91 = vector.shape_cast %90 : vector<1x8x1xf32> to vector<8x1xf32>
      %92 = vector.broadcast %91 : vector<8x1xf32> to vector<8x8xf32>
      %93 = arith.mulf %89, %92 : vector<8x8xf32>
      %94 = arith.truncf %93 : vector<8x8xf32> to vector<8x8xbf16>
      %c0_59 = arith.constant 0 : index
      %c0_60 = arith.constant 0 : index
      %c24 = arith.constant 24 : index
      %95 = vector.load %arg8[%c0_59, %c0_60, %c24] : memref<1x8x32xbf16, #tpu.memory_space<vmem>>, vector<1x8x8xbf16>
      %96 = vector.shape_cast %95 : vector<1x8x8xbf16> to vector<8x8xbf16>
      %97 = vector.shape_cast %94 : vector<8x8xbf16> to vector<1x8x8xbf16>
      tpu.vector_store %arg8[%c0_59, %c0_60, %c24], %97 {strides = array<i32>} : memref<1x8x32xbf16, #tpu.memory_space<vmem>>, vector<1x8x8xbf16>,
    } else {
    }
    return
  }
  func.func @transform_0(%arg0: i32, %arg1: i32, %arg2: i32, %arg3: memref<1xi32, #tpu.memory_space<smem>>, %arg4: memref<1xi32, #tpu.memory_space<smem>>) -> (i32, i32, i32, i32, i32) {
    %0 = arith.index_cast %arg2 : i32 to index
    %1 = memref.load %arg3[%0] : memref<1xi32, #tpu.memory_space<smem>>
    %c0_i32 = arith.constant 0 : i32
    %c0_i32_0 = arith.constant 0 : i32
    %c0_i32_1 = arith.constant 0 : i32
    return %arg0, %1, %c0_i32, %arg1, %c0_i32_0 : i32, i32, i32, i32, i32
  }
  func.func @transform_1(%arg0: i32, %arg1: i32, %arg2: i32, %arg3: memref<1xi32, #tpu.memory_space<smem>>, %arg4: memref<1xi32, #tpu.memory_space<smem>>) -> (i32, i32, i32, i32, i32) {
    %0 = arith.index_cast %arg2 : i32 to index
    %1 = memref.load %arg4[%0] : memref<1xi32, #tpu.memory_space<smem>>
    %c1_i32 = arith.constant 1 : i32
    %c0_i32 = arith.constant 0 : i32
    %c0_i32_0 = arith.constant 0 : i32
    return %arg0, %1, %c1_i32, %arg1, %c0_i32 : i32, i32, i32, i32, i32
  }
  func.func @transform_2(%arg0: i32, %arg1: i32, %arg2: i32, %arg3: memref<1xi32, #tpu.memory_space<smem>>, %arg4: memref<1xi32, #tpu.memory_space<smem>>) -> (i32, i32, i32, i32, i32) {
    %0 = arith.index_cast %arg2 : i32 to index
    %1 = memref.load %arg4[%0] : memref<1xi32, #tpu.memory_space<smem>>
    %c2_i32 = arith.constant 2 : i32
    %c0_i32 = arith.constant 0 : i32
    %c0_i32_0 = arith.constant 0 : i32
    return %arg0, %1, %c2_i32, %arg1, %c0_i32 : i32, i32, i32, i32, i32
  }
  func.func @transform_3(%arg0: i32, %arg1: i32, %arg2: i32, %arg3: memref<1xi32, #tpu.memory_space<smem>>, %arg4: memref<1xi32, #tpu.memory_space<smem>>) -> (i32, i32, i32) {
    %0 = arith.index_cast %arg2 : i32 to index
    %1 = memref.load %arg3[%0] : memref<1xi32, #tpu.memory_space<smem>>
    %c0_i32 = arith.constant 0 : i32
    return %arg0, %1, %arg1 : i32, i32, i32
  }
}

module attributes {stable_mosaic.version = 11 : i64} {
  func.func @_linear_kernel(%arg0: i32, %arg1: i32, %arg2: i32, %arg3: memref<16x32xbf16, #tpu.memory_space<vmem>>, %arg4: memref<32x32xbf16, #tpu.memory_space<vmem>>, %arg5: memref<1x32xf32, #tpu.memory_space<vmem>>, %arg6: memref<16x32xf32, #tpu.memory_space<vmem>>, %arg7: memref<16x32xf32, #tpu.memory_space<vmem>>) attributes {dimension_semantics = [#tpu.dimension_semantics<parallel>, #tpu.dimension_semantics<parallel>, #tpu.dimension_semantics<arbitrary>], iteration_bounds = array<i64: 1, 1, 1>, scalar_prefetch = 0 : i64, scratch_operands = 1 : i64, tpu.core_type = #tpu.core_type<tc>, window_params = [{transform_indices = @transform_0, window_bounds = array<i64: 16, 32>}, {transform_indices = @transform_1, window_bounds = array<i64: 32, 32>}, {transform_indices = @transform_2, window_bounds = array<i64: 1, 32>}, {transform_indices = @transform_3, window_bounds = array<i64: 16, 32>}]} {
    %c0_i32 = arith.constant 0 : i32
    %0 = arith.cmpi eq, %arg2, %c0_i32 : i32
    %1 = arith.extui %0 : i1 to i32
    %c0_i32_0 = arith.constant 0 : i32
    %2 = arith.cmpi ne, %1, %c0_i32_0 : i32
    scf.if %2 {
      %cst_10 = arith.constant 0.000000e+00 : f32
      %12 = vector.broadcast %cst_10 : f32 to vector<16x32xf32>
      %c0_11 = arith.constant 0 : index
      %c0_12 = arith.constant 0 : index
      %13 = vector.load %arg7[%c0_11, %c0_12] : memref<16x32xf32, #tpu.memory_space<vmem>>, vector<16x32xf32>
      tpu.vector_store %arg7[%c0_11, %c0_12], %12 {strides = array<i32>} : memref<16x32xf32, #tpu.memory_space<vmem>>, vector<16x32xf32>,
    } else {
    }
    %c0 = arith.constant 0 : index
    %c0_1 = arith.constant 0 : index
    %3 = vector.load %arg7[%c0, %c0_1] : memref<16x32xf32, #tpu.memory_space<vmem>>, vector<16x32xf32>
    %c0_2 = arith.constant 0 : index
    %c0_3 = arith.constant 0 : index
    %4 = vector.load %arg3[%c0_2, %c0_3] : memref<16x32xbf16, #tpu.memory_space<vmem>>, vector<16x32xbf16>
    %c0_4 = arith.constant 0 : index
    %c0_5 = arith.constant 0 : index
    %5 = vector.load %arg4[%c0_4, %c0_5] : memref<32x32xbf16, #tpu.memory_space<vmem>>, vector<32x32xbf16>
    %cst = arith.constant dense<0.000000e+00> : vector<16x32xf32>
    %6 = tpu.matmul %4, %5, %cst {dimension_numbers = #tpu.dot_dimension_numbers<[1], [0], [0], [1], [0, 0, 1, 1], [], []>} : vector<16x32xbf16>, vector<32x32xbf16>, vector<16x32xf32> -> vector<16x32xf32>
    %7 = arith.addf %3, %6 : vector<16x32xf32>
    %c0_6 = arith.constant 0 : index
    %c0_7 = arith.constant 0 : index
    %8 = vector.load %arg7[%c0_6, %c0_7] : memref<16x32xf32, #tpu.memory_space<vmem>>, vector<16x32xf32>
    tpu.vector_store %arg7[%c0_6, %c0_7], %7 {strides = array<i32>} : memref<16x32xf32, #tpu.memory_space<vmem>>, vector<16x32xf32>,
    %c0_i32_8 = arith.constant 0 : i32
    %9 = arith.cmpi eq, %arg2, %c0_i32_8 : i32
    %10 = arith.extui %9 : i1 to i32
    %c0_i32_9 = arith.constant 0 : i32
    %11 = arith.cmpi ne, %10, %c0_i32_9 : i32
    scf.if %11 {
      %c0_10 = arith.constant 0 : index
      %c0_11 = arith.constant 0 : index
      %12 = vector.load %arg7[%c0_10, %c0_11] : memref<16x32xf32, #tpu.memory_space<vmem>>, vector<16x32xf32>
      %c0_12 = arith.constant 0 : index
      %c0_13 = arith.constant 0 : index
      %13 = vector.load %arg5[%c0_12, %c0_13] : memref<1x32xf32, #tpu.memory_space<vmem>>, vector<1x32xf32>
      %14 = vector.broadcast %13 : vector<1x32xf32> to vector<16x32xf32>
      %15 = arith.addf %12, %14 : vector<16x32xf32>
      %c0_14 = arith.constant 0 : index
      %c0_15 = arith.constant 0 : index
      %16 = vector.load %arg6[%c0_14, %c0_15] : memref<16x32xf32, #tpu.memory_space<vmem>>, vector<16x32xf32>
      tpu.vector_store %arg6[%c0_14, %c0_15], %15 {strides = array<i32>} : memref<16x32xf32, #tpu.memory_space<vmem>>, vector<16x32xf32>,
    } else {
    }
    return
  }
  func.func @transform_0(%arg0: i32, %arg1: i32, %arg2: i32) -> (i32, i32) {
    %c0_i32 = arith.constant 0 : i32
    return %arg0, %arg2 : i32, i32
  }
  func.func @transform_1(%arg0: i32, %arg1: i32, %arg2: i32) -> (i32, i32) {
    %c0_i32 = arith.constant 0 : i32
    return %arg2, %arg1 : i32, i32
  }
  func.func @transform_2(%arg0: i32, %arg1: i32, %arg2: i32) -> (i32, i32) {
    %c0_i32 = arith.constant 0 : i32
    %c0_i32_0 = arith.constant 0 : i32
    return %c0_i32, %arg1 : i32, i32
  }
  func.func @transform_3(%arg0: i32, %arg1: i32, %arg2: i32) -> (i32, i32) {
    %c0_i32 = arith.constant 0 : i32
    return %arg0, %arg1 : i32, i32
  }
}

</mosaic_0001>

<bundles_post_ra>
// kernel: self_attention.3
= control target key start
LH: loop header
LB: loop body
LE: loop exit
PB: predicated region body
PF: predicated region fallthrough
CT: control target
= control target key end

     0   :  { %vm19_vm0 = vcmask 785408   ;;  %v151_v0 = vmov 0.0   ;;  %vm152_vm1 = vmmov 0   ;;  %vm47_vm2 = vcmask 261120   ;;  %s195_s1 = inlined_call_operand.vmem [shape: bf16[32,96], index: 1, kind: input, shape index: {}]   ;;  %s196_s0 = inlined_call_operand.vmem [shape: bf16[16,32], index: 0, kind: input, shape index: {}]   ;;  %s197_s2 = inlined_call_operand.vmem [shape: f32[1,96], index: 2, kind: input, shape index: {}]   ;;  %s198_s3 = inlined_call_operand.vmem [shape: bf16[16,96], index: 3, kind: output, shape index: {}]  }
   0x1   :  { %138 = vmatprep.subr.bf16.mxu0 %v151_v0  ;;  %v148_v1 = vld [vmem:[%s195_s1] sm:$0xff]   ;;  %142 = vmatprep.mubr.msk.bf16.mxu0 %vm152_vm1, %v151_v0  ;;  %20 = vst.msk [vmem:[#allocation2] sm:$0xff] %vm19_vm0, %v151_v0  ;;  %21 = vst.msk [vmem:[#allocation2 + $0x8] sm:$0xff] %vm19_vm0, %v151_v0  ;;  %v149_v2 = vld [vmem:[%s195_s1 + $0x8] sm:$0xff]   ;;  %vm119_vm3 = vcmask 781312  }
   0x2   :  { %139 = vmatpush3.bf16.msra.mxu0 %v148_v1  ;;  %v150_v3 = vld [vmem:[%s196_s0] sm:$0xff]  }
   0x3   :  { %140 = vmatprep.subr.bf16.mxu0 %v151_v0  ;;  %v130_v12 = vld [vmem:[%s197_s2] ss:$0 sm:$0xff] }
   0x6   :  { %141 = vmatpush3.bf16.msra.mxu0 %v149_v2 }
   0x8   :  { %v22_v4 = vld [vmem:[#allocation2] sm:$0xff]  ;;  %v23_v6 = vld [vmem:[#allocation2 + $0x8] sm:$0xff] }
   0x9   :  { %143 = vmatmul.mubr.msk.bf16.vlgmr.msra.gmra.mrb[0].mxu0 %vm47_vm2, %v150_v3 }
  0xdc   :  { %v85_v5 = vpop.f32.mrb[0].mxu0 }
  0xdd   :  { %v92_v7 = vadd.f32 %v85_v5, %v22_v4  ;;  %v144_v8 = vpop.f32.mrb[1].mxu0 }
  0xde   :  { %v88_v9 = vpop.f32.mrb[2].mxu0 }
  0xdf   :  { %95 = vst.msk [vmem:[#allocation2] sm:$0xff] %vm19_vm0, %v92_v7  ;;  %v93_v10 = vadd.f32 %v88_v9, %v23_v6  ;;  %v145_v11 = vpop.f32.mrb[3].mxu0 }
  0xe1   :  { %96 = vst.msk [vmem:[#allocation2 + $0x8] sm:$0xff] %vm19_vm0, %v93_v10 }
  0xe6   :  { %v100_v13 = vld [vmem:[#allocation2] sm:$0xff] }
  0xe7   :  { %v109_v14 = vadd.f32 %v130_v12, %v100_v13 }
  0xe8   :  { %v101_v15 = vld [vmem:[#allocation2 + $0x8] sm:$0xff] }
  0xe9   :  { %v133_v16 = vpack.c.bf16 %v109_v14, %v109_v14  ;;  %v110_v17 = vadd.f32 %v130_v12, %v101_v15 }
  0xeb   :  { %120 = vst.msk [vmem:[%s198_s3] sm:$0xf] %vm119_vm3, %v133_v16  ;;  %v134_v18 = vpack.c.bf16 %v110_v17, %v110_v17 }
  0xed   :  { %121 = vst.msk [vmem:[%s198_s3 + $0x4] sm:$0xf] %vm119_vm3, %v134_v18 }

// kernel: self_attention.5
= control target key start
LH: loop header
LB: loop body
LE: loop exit
PB: predicated region body
PF: predicated region fallthrough
CT: control target
= control target key end

     0   :  { %v177_v1 = vmov 0.0   ;;  %vm178_vm0 = vmmov 0   ;;  %vm20_vm1 = vcmask 261120   ;;  %s233_s0 = inlined_call_operand.vmem [shape: bf16[16,32], index: 0, kind: input, shape index: {}]   ;;  %s234_s1 = inlined_call_operand.vmem [shape: bf16[32,32], index: 1, kind: input, shape index: {}]   ;;  %s235_s2 = inlined_call_operand.vmem [shape: f32[1,32], index: 2, kind: input, shape index: {}]   ;;  %s236_s3 = inlined_call_operand.hbm [shape: f32[16,32], index: 3, kind: output, shape index: {}]  }
   0x1   :  { %v150_v0 = vld [vmem:[%s234_s1] sm:$0xff]   ;;  %137 = vmatprep.subr.bf16.mxu0 %v177_v1  ;;  %v151_v2 = vld [vmem:[%s234_s1 + $0x8] sm:$0xff]   ;;  %141 = vmatprep.mubr.msk.bf16.mxu0 %vm178_vm0, %v177_v1  ;;  %21 = vst.msk [vmem:[#allocation2] sm:$0xff] %vm20_vm1, %v177_v1  ;;  %22 = vst.msk [vmem:[#allocation2 + $0x8] sm:$0xff] %vm20_vm1, %v177_v1 }
   0x2   :  { %138 = vmatpush3.bf16.msra.mxu0 %v150_v0 }
   0x3   :  { %139 = vmatprep.subr.bf16.mxu0 %v177_v1 }
   0x4   :  { %8 = vsyncpa [#allocation4], 0  ;;  %v152_v3 = vld [vmem:[%s233_s0] sm:$0xff]   ;;  %s179_s0 = smov [#allocation3]  }
   0x5   :  { %v133_v12 = vld [vmem:[%s235_s2] ss:$0 sm:$0xff]  ;;  %s118_s19 = sshll.u32 %s179_s0, 4  ;;  %s119_s19 = int_to_ptr.vmem [resolvable:$true] %s118_s19 }
   0x6   :  { %140 = vmatpush3.bf16.msra.mxu0 %v151_v2  ;;  %s153_s20 = scalar_lea.vmem %s119_s19, 256  ;;  %p158_p1 = scmp.lt.s32.totalorder %s119_s19, %s119_s19 }
   0x7   :  { %p154_p0 = scmp.ne.s32.totalorder %s119_s19, %s153_s20  ;;  %p159_p2 = scmp.lt.s32.totalorder %s153_s20, %s153_s20 }
   0x8   :  { %v23_v4 = vld [vmem:[#allocation2] sm:$0xff]  ;;  %v24_v6 = vld [vmem:[#allocation2 + $0x8] sm:$0xff] }
   0x9   :  { %142 = vmatmul.mubr.msk.bf16.vlgmr.msra.gmra.mrb[0].mxu0 %vm20_vm1, %v152_v3  ;;  %p160_p3 = por %p159_p2, %p158_p1 }
   0xb   :  { %p161_p4 = pnand %p160_p3, %p154_p0 }
  0xdc   :  { %v86_v5 = vpop.f32.mrb[0].mxu0 }
  0xdd   :  { %v93_v7 = vadd.f32 %v86_v5, %v23_v4  ;;  %v143_v8 = vpop.f32.mrb[1].mxu0 }
  0xde   :  { %v89_v9 = vpop.f32.mrb[2].mxu0 }
  0xdf   :  { %95 = vst.msk [vmem:[#allocation2] sm:$0xff] %vm20_vm1, %v93_v7  ;;  %v94_v10 = vadd.f32 %v89_v9, %v24_v6  ;;  %v144_v11 = vpop.f32.mrb[3].mxu0 }
  0xe1   :  { %96 = vst.msk [vmem:[#allocation2 + $0x8] sm:$0xff] %vm20_vm1, %v94_v10 }
  0xe6   :  { %v100_v13 = vld [vmem:[#allocation2] sm:$0xff] }
  0xe7   :  { %v109_v14 = vadd.f32 %v133_v12, %v100_v13 }
  0xe8   :  { %v101_v15 = vld [vmem:[#allocation2 + $0x8] sm:$0xff] }
  0xe9   :  { %v110_v16 = vadd.f32 %v133_v12, %v101_v15  ;;  %111 = vst.msk [vmem:[#allocation3] sm:$0xff] %vm20_vm1, %v109_v14 }
  0xeb   :  { %112 = vst.msk [vmem:[#allocation3 + $0x8] sm:$0xff] %vm20_vm1, %v110_v16 }
  0xec   :  { %164 = shalt.err (!%p161_p4)
}
  0xed   :  { %s165_s22 = scalar_lea.hbm %s236_s3, 256 }
  0xee   :  { %p166_p5 = scmp.ne.s32.totalorder %s236_s3, %s165_s22  ;;  %p169_p6 = scmp.lt.u32.totalorder %s165_s22, %s236_s3 }
  0xf0   :  { %p171_p7 = pnand %p169_p6, %p166_p5 }
  0xf2   :  { %174 = shalt.err (!%p171_p7)
}
  0xf3   :  { %s180_s27 = smov 128   ;;  %s181_s28 = smov 8  }
  0xf4   :  { %124 = dma.vmem_to_hbm [thread:$0]  %s119_s19, 256, %s236_s3, [#allocation4], %s180_s27, %s180_s27, %s181_s28  }
  0xf5   :  { %175 = dma.done.wait [#allocation4], 256  }
  0xf6   :  { %176 = vsyncadd [#allocation4], 4294967040 }
  0xf7   :  { %128 = vsyncpa [#allocation4], 1 }

// kernel: self_attention.4
= control target key start
LH: loop header
LB: loop body
LE: loop exit
PB: predicated region body
PF: predicated region fallthrough
CT: control target
= control target key end

     0   :  { %s3407_s0 = inlined_call_operand.<no memory space> [shape: s32[1], index: 0, kind: input, shape index: {}, may-alias: {0,1}]   ;;  %s3408_s1 = inlined_call_operand.<no memory space> [shape: s32[1], index: 1, kind: input, shape index: {}, may-alias: {0,1}]   ;;  %s3409_s2 = inlined_call_operand.vmem [shape: bf16[2,8,3,4,8], index: 2, kind: input, shape index: {}, may-alias: {2,3,4}]   ;;  %s3410_s3 = inlined_call_operand.vmem [shape: bf16[2,8,3,4,8], index: 3, kind: input, shape index: {}, may-alias: {2,3,4}]   ;;  %s3411_s4 = inlined_call_operand.vmem [shape: bf16[2,8,3,4,8], index: 4, kind: input, shape index: {}, may-alias: {2,3,4}]   ;;  %s3412_s5 = inlined_call_operand.vmem [shape: bf16[2,8,32], index: 5, kind: output, shape index: {}]  }
   0x1   :  { %10 = sst [smem:[#allocation6]] %s3407_s0 }
   0x2   :  { %11 = sst [smem:[#allocation7]] %s3408_s1 }
   0x3   :  { %s2910_s22 = smov 0   ;;  %s2912_s23 = smov 0  }
   0x4   :  { %s2914_s24 = smov 0   ;;  %s2916_s25 = smov 0  }
   0x5   :  { %s2918_s26 = smov 0   ;;  %s2920_s27 = smov 0  }
   0x6   :  { %s2922_s28 = smov 0   ;;  %s2924_s29 = smov 0  }
   0x7   :  { %s2926_s0 = smov 0  }
   0x8 LB: > { %s36_s1 = sadd.s32 1, %s2855_s29  ;;  %p56_p1 = scmp.ne.s32.totalorder %s2847_s27, %s2843_s26  ;;  %s2859_s0 = sphi %s2926_s0, %s17_s0   ;;  %s2855_s29 = sphi %s2924_s29, %s3423_s29   ;;  %s2851_s28 = sphi %s2922_s28, %s3422_s28   ;;  %s2847_s27 = sphi %s2920_s27, %s3421_s27   ;;  %s2843_s26 = sphi %s2918_s26, %s3420_s26   ;;  %s2839_s25 = sphi %s2916_s25, %s3419_s25   ;;  %s2835_s24 = sphi %s2914_s24, %s3418_s24   ;;  %s2831_s23 = sphi %s2912_s23, %s3417_s23   ;;  %s2827_s22 = sphi %s2910_s22, %s3416_s22  }
   0x9   : > { %p38_p0 = scmp.ge.s32.totalorder %s36_s1, 2  ;;  %p57_p2 = scmp.eq.s32.totalorder %s2859_s0, 0 }
   0xa   : > { %p88_p4 = scmp.ne.s32.totalorder %s2839_s25, %s2835_s24  ;;  %s49_s7 = sadd.s32 1, %s2847_s27 }
   0xb   : > { %s3425_s1 = smov (%p38_p0, %s36_s1), 0  ;;  %p2961_p3 = por %p57_p2, %p56_p1 }
   0xc   : > { %s42_s6 = ssub.s32 %s2855_s29, %s3425_s1  ;;  %p2970_p6 = por %p88_p4, %p57_p2 }
   0xd   : > { %p47_p5 = scmp.eq.s32.totalorder %s42_s6, 0  ;;  %p120_p7 = scmp.ne.s32.totalorder %s2831_s23, %s2827_s22 }
   0xe   : > { %s81_s11 = sadd.s32 1, %s2839_s25  ;;  %s113_s12 = sadd.s32 1, %s2831_s23 }
   0xf   : > { %s2977_s9 = scalar_select %p47_p5, %s2847_s27, %s49_s7  }
  0x10   : > { %p2979_p8 = por %p120_p7, %p57_p2  ;;  %p2423_p9 = scmp.ge.s32.totalorder %s2859_s0, 2 }
  0x11   : > { %s2986_s13 = scalar_select %p47_p5, %s2839_s25, %s81_s11  }
  0x12   : > { %s2989_s14 = scalar_select %p47_p5, %s2831_s23, %s113_s12  }
  0x13   : > { %178 = sbr.rel (%p2423_p9) target bundleno = 77 (0x4d), region = 16 }
  0x1a   : > { %181 = sbr.rel (!%p2961_p3) target bundleno = 43 (0x2b), region = 20  ;;  %s186_s15 = sld [smem:[#allocation6]] (%p2961_p3) }
  0x1b   : > { %s183_s16 = sand.u32 (%p2961_p3), 1, %s2847_s27   ;;  %s2609_s17 = smul.u32 (%p2961_p3), 24, %s2855_s29 }
  0x1c   : > { %s2424_s18 = sshll.u32 (%p2961_p3), %s183_s16, 4 }
  0x1d   : > { %s185_s12 = scalar_lea.vmem (%p2961_p3), [#allocation8], %s2424_s18 }
  0x20   : > { %s2608_s19 = smul.u32 (%p2961_p3), 24, %s186_s15 }
  0x22   : > { %s191_s20 = sadd.s32 %s2609_s17, %s2608_s19 }
  0x23   : > { %s2427_s21 = sshll.u32 %s191_s20, 1 }
  0x24   : > { %s193_s11 = scalar_lea.vmem %s3409_s2, %s2427_s21 }
  0x25   : > { %v209_v0 = vld [vmem:[%s193_s11] sm:$0x3]  ;;  %v211_v1 = vld [vmem:[%s193_s11 + $0x6] sm:$0x3]  ;;  %v213_v2 = vld [vmem:[%s193_s11 + $0xc] sm:$0x3] }
  0x26   : > { %210 = vst [vmem:[%s185_s12] sm:$0x3] %v209_v0  ;;  %212 = vst [vmem:[%s185_s12 + $0x2] sm:$0x3] %v211_v1  ;;  %v215_v3 = vld [vmem:[%s193_s11 + $0x12] sm:$0x3] }
  0x27   : > { %214 = vst [vmem:[%s185_s12 + $0x4] sm:$0x3] %v213_v2  ;;  %v217_v4 = vld [vmem:[%s193_s11 + $0x18] sm:$0x3]  ;;  %v219_v5 = vld [vmem:[%s193_s11 + $0x1e] sm:$0x3] }
  0x28   : > { %216 = vst [vmem:[%s185_s12 + $0x6] sm:$0x3] %v215_v3  ;;  %218 = vst [vmem:[%s185_s12 + $0x8] sm:$0x3] %v217_v4  ;;  %v221_v6 = vld [vmem:[%s193_s11 + $0x24] sm:$0x3] }
  0x29   : > { %220 = vst [vmem:[%s185_s12 + $0xa] sm:$0x3] %v219_v5  ;;  %v223_v7 = vld [vmem:[%s193_s11 + $0x2a] sm:$0x3]  ;;  %222 = vst [vmem:[%s185_s12 + $0xc] sm:$0x3] %v221_v6 }
  0x2a   : > { %224 = vst [vmem:[%s185_s12 + $0xe] sm:$0x3] %v223_v7 }
  0x2b PF: > { %263 = sbr.rel (!%p2970_p6) target bundleno = 60 (0x3c), region = 61  ;;  %s268_s30 = sld [smem:[#allocation7]] (%p2970_p6) }
  0x2c   : > { %s265_s15 = sand.u32 (%p2970_p6), 1, %s2839_s25   ;;  %s2322_s16 = smul.u32 (%p2970_p6), 24, %s2855_s29 }
  0x2d   : > { %s2428_s17 = sshll.u32 (%p2970_p6), %s265_s15, 4 }
  0x2e   : > { %s267_s11 = scalar_lea.vmem (%p2970_p6), [#allocation9], %s2428_s17 }
  0x31   : > { %s2320_s18 = smul.u32 (%p2970_p6), 24, %s268_s30 }
  0x33   : > { %s2323_s19 = sadd.s32 %s2322_s16, %s2320_s18 }
  0x34   : > { %s2429_s20 = sshll.u32 %s2323_s19, 1 }
  0x35   : > { %s2325_s7 = scalar_lea.vmem %s3410_s3, %s2429_s20 }
  0x36   : > { %v2430_v8 = vld [vmem:[%s2325_s7 + $0x2] sm:$0x3]  ;;  %v2431_v9 = vld [vmem:[%s2325_s7 + $0x8] sm:$0x3]  ;;  %v2432_v10 = vld [vmem:[%s2325_s7 + $0xe] sm:$0x3] }
  0x37   : > { %293 = vst [vmem:[%s267_s11] sm:$0x3] %v2430_v8  ;;  %295 = vst [vmem:[%s267_s11 + $0x2] sm:$0x3] %v2431_v9  ;;  %v2433_v11 = vld [vmem:[%s2325_s7 + $0x14] sm:$0x3] }
  0x38   : > { %297 = vst [vmem:[%s267_s11 + $0x4] sm:$0x3] %v2432_v10  ;;  %v2434_v12 = vld [vmem:[%s2325_s7 + $0x1a] sm:$0x3]  ;;  %v2435_v13 = vld [vmem:[%s2325_s7 + $0x20] sm:$0x3] }
  0x39   : > { %299 = vst [vmem:[%s267_s11 + $0x6] sm:$0x3] %v2433_v11  ;;  %301 = vst [vmem:[%s267_s11 + $0x8] sm:$0x3] %v2434_v12  ;;  %v2436_v14 = vld [vmem:[%s2325_s7 + $0x26] sm:$0x3] }
  0x3a   : > { %303 = vst [vmem:[%s267_s11 + $0xa] sm:$0x3] %v2435_v13  ;;  %v2437_v15 = vld [vmem:[%s2325_s7 + $0x2c] sm:$0x3]  ;;  %305 = vst [vmem:[%s267_s11 + $0xc] sm:$0x3] %v2436_v14 }
  0x3b   : > { %307 = vst [vmem:[%s267_s11 + $0xe] sm:$0x3] %v2437_v15 }
  0x3c PF: > { %346 = sbr.rel (!%p2979_p8) target bundleno = 77 (0x4d), region = 102  ;;  %s351_s8 = sld [smem:[#allocation7]] (%p2979_p8) }
  0x3d   : > { %s348_s12 = sand.u32 (%p2979_p8), 1, %s2831_s23   ;;  %s2331_s30 = smul.u32 (%p2979_p8), 24, %s2855_s29 }
  0x3e   : > { %s2438_s15 = sshll.u32 (%p2979_p8), %s348_s12, 4 }
  0x3f   : > { %s350_s6 = scalar_lea.vmem (%p2979_p8), [#allocation10], %s2438_s15 }
  0x42   : > { %s2329_s16 = smul.u32 (%p2979_p8), 24, %s351_s8 }
  0x44   : > { %s2332_s17 = sadd.s32 %s2331_s30, %s2329_s16 }
  0x45   : > { %s2439_s18 = sshll.u32 %s2332_s17, 1 }
  0x46   : > { %s2334_s21 = scalar_lea.vmem %s3411_s4, %s2439_s18 }
  0x47   : > { %v2440_v16 = vld [vmem:[%s2334_s21 + $0x4] sm:$0x3]  ;;  %v2441_v17 = vld [vmem:[%s2334_s21 + $0xa] sm:$0x3]  ;;  %v2442_v18 = vld [vmem:[%s2334_s21 + $0x10] sm:$0x3] }
  0x48   : > { %376 = vst [vmem:[%s350_s6] sm:$0x3] %v2440_v16  ;;  %378 = vst [vmem:[%s350_s6 + $0x2] sm:$0x3] %v2441_v17  ;;  %v2443_v19 = vld [vmem:[%s2334_s21 + $0x16] sm:$0x3] }
  0x49   : > { %380 = vst [vmem:[%s350_s6 + $0x4] sm:$0x3] %v2442_v18  ;;  %v2444_v20 = vld [vmem:[%s2334_s21 + $0x1c] sm:$0x3]  ;;  %v2445_v21 = vld [vmem:[%s2334_s21 + $0x22] sm:$0x3] }
  0x4a   : > { %382 = vst [vmem:[%s350_s6 + $0x6] sm:$0x3] %v2443_v19  ;;  %384 = vst [vmem:[%s350_s6 + $0x8] sm:$0x3] %v2444_v20  ;;  %v2446_v22 = vld [vmem:[%s2334_s21 + $0x28] sm:$0x3] }
  0x4b   : > { %386 = vst [vmem:[%s350_s6 + $0xa] sm:$0x3] %v2445_v21  ;;  %v2447_v23 = vld [vmem:[%s2334_s21 + $0x2e] sm:$0x3]  ;;  %388 = vst [vmem:[%s350_s6 + $0xc] sm:$0x3] %v2446_v22 }
  0x4c   : > { %390 = vst [vmem:[%s350_s6 + $0xe] sm:$0x3] %v2447_v23 }
  0x4d PF: > { %p2448_p10 = scmp.ge.s32.totalorder %s2859_s0, 1  ;;  %p428_p11 = scmp.lt.s32.totalorder %s2859_s0, 3 }
  0x4f   : > { %p429_p12 = pnand %p2448_p10, %p428_p11 }
  0x50   : > { %s435_s10 = sand.u32 (!%p429_p12), 1, %s2843_s26   ;;  %s442_s7 = sand.u32 (!%p429_p12), 1, %s2835_s24  }
  0x51   : > { %432 = sbr.rel (%p429_p12) target bundleno = 1795 (0x703), region = 143  ;;  %s2449_s11 = sshll.u32 (!%p429_p12), %s435_s10, 4 }
  0x52   : > { %s2450_s8 = sshll.u32 (!%p429_p12), %s442_s7, 4  ;;  %s449_s12 = sand.u32 (!%p429_p12), 1, %s2827_s22  }
  0x53   : > { %s3018_s30 = sld [smem:[#allocation6]] (!%p429_p12)  ;;  %s2451_s15 = sshll.u32 (!%p429_p12), %s449_s12, 4 }
  0x54   : > { %p493_p13 = scmp.lt.s32.totalorder (!%p429_p12), %s2851_s28, 1  ;;  %s3021_s16 = sld [smem:[#allocation7]] (!%p429_p12) }
  0x55   : > { %s3031_s26 = scalar_lea.vmem (!%p429_p12), [#allocation8], %s2449_s11  ;;  %s3033_s22 = scalar_lea.vmem (!%p429_p12), [#allocation9], %s2450_s8 }
  0x56   : > { %s3035_s6 = scalar_lea.vmem (!%p429_p12), [#allocation10], %s2451_s15 }
  0x58   : > { %s3427_s28 = smov (!%p493_p13, %s2851_s28), 1 }
  0x59   : > { %p495_p0 = scmp.lt.s32.totalorder %s3018_s30, 0 }
  0x5a   : > { %p2453_p1 = scmp.ne.s32.totalorder %s3021_s16, 0 }
  0x5b   : > { %s496_s17 = scalar_select %p495_p0, %s3018_s30, 0 }
  0x5c   : > { %511 = sbr.rel (%p2453_p1) target bundleno = 99 (0x63), region = 159  ;;  %vm512_vm0 = vcmask (!%p2453_p1), 7168   ;;  %vm521_vm1 = vcmask (!%p2453_p1), 64512   ;;  %v2861_v24 = vmov (!%p2453_p1), -1e+30   ;;  %v2862_v25 = vmov (!%p2453_p1), 0.0  }
  0x5d   : > { %s500_s18 = sadd.s32 %s496_s17, %s3427_s28  ;;  %513 = vst.msk [vmem:[#allocation2] sm:$0xff] (!%p2453_p1), %vm512_vm0, %v2861_v24  ;;  %514 = vst.msk [vmem:[#allocation2 + $0x8] sm:$0xff] (!%p2453_p1), %vm512_vm0, %v2861_v24 }
  0x5e   : > { %s2452_s19 = sshll.u32 %s500_s18, 2  ;;  %515 = vst.msk [vmem:[#allocation2 + $0x10] sm:$0xff] (!%p2453_p1), %vm512_vm0, %v2861_v24  ;;  %516 = vst.msk [vmem:[#allocation2 + $0x18] sm:$0xff] (!%p2453_p1), %vm512_vm0, %v2861_v24 }
  0x5f   : > { %s3029_s24 = scalar_lea.vmem %s3412_s5, %s2452_s19  ;;  %517 = vst.msk [vmem:[#allocation3] sm:$0xff] (!%p2453_p1), %vm512_vm0, %v2862_v25  ;;  %518 = vst.msk [vmem:[#allocation3 + $0x8] sm:$0xff] (!%p2453_p1), %vm512_vm0, %v2862_v25 }
  0x60   : > { %519 = vst.msk [vmem:[#allocation3 + $0x10] sm:$0xff] (!%p2453_p1), %vm512_vm0, %v2862_v25  ;;  %520 = vst.msk [vmem:[#allocation3 + $0x18] sm:$0xff] (!%p2453_p1), %vm512_vm0, %v2862_v25 }
  0x61   : > { %522 = vst.msk [vmem:[#allocation4] sm:$0xff] (!%p2453_p1), %vm521_vm1, %v2862_v25  ;;  %523 = vst.msk [vmem:[#allocation4 + $0x8] sm:$0xff] (!%p2453_p1), %vm521_vm1, %v2862_v25 }
  0x62   : > { %524 = vst.msk [vmem:[#allocation4 + $0x10] sm:$0xff] (!%p2453_p1), %vm521_vm1, %v2862_v25  ;;  %525 = vst.msk [vmem:[#allocation4 + $0x18] sm:$0xff] (!%p2453_p1), %vm521_vm1, %v2862_v25 }
  0x63 PF: > { %p2454_p2 = scmp.ge.s32.totalorder %s3021_s16, %s3018_s30 }
  0x64   : > { %v542_v26 = vlaneseq (!%p2454_p2)  ;;  %v2863_v27 = vmov (!%p2454_p2), 0.0   ;;  %v2765_v29 = vld.sshfl [vmem:[%s3033_s22] sm:$0x33 pattern:$0x73516240] (!%p2454_p2)  ;;  %vm2864_vm2 = vmmov (!%p2454_p2), 0  }
  0x65   : > { %529 = sbr.rel (%p2454_p2) target bundleno = 849 (0x351), region = 163  ;;  %2512 = vmatprep.subr.bf16.mxu0 (!%p2454_p2), %v2863_v27  ;;  %2518 = vmatprep.subr.bf16.mxu1 (!%p2454_p2), %v2863_v27  ;;  %v2766_v30 = vld.sshfl [vmem:[%s3033_s22 + $0x2] sm:$0x33 pattern:$0x73516240] (!%p2454_p2)  ;;  %vm768_vm3 = vcmask (!%p2454_p2), 64512  }
  0x66   : > { %v543_v28 = vshrl.u32 (!%p2454_p2), %v542_v26, 7  ;;  %2514 = vmatprep.mubr.msk.bf16.mxu0 (!%p2454_p2), %vm2864_vm2, %v2863_v27  ;;  %2520 = vmatprep.mubr.msk.bf16.mxu1 (!%p2454_p2), %vm2864_vm2, %v2863_v27  ;;  %v2767_v31 = vld.sshfl [vmem:[%s3033_s22 + $0x8] sm:$0x33 pattern:$0x73516240] (!%p2454_p2)  ;;  %v660_v39 = vpack.i.b16 (!%p2454_p2), %v2766_v30, %v2765_v29  ;;  %v661_v41 = vshrl.u32 (!%p2454_p2), %v2765_v29, 16 }
  0x67   : > { %v2768_v32 = vld.sshfl [vmem:[%s3033_s22 + $0xa] sm:$0x33 pattern:$0x73516240] (!%p2454_p2)  ;;  %v2865_v33 = vmov (!%p2454_p2), 1983009808  }
  0x68   : > { %v754_v34 = vunpack.c.l.s4 (!%p2454_p2), %v2865_v33  ;;  %v2769_v36 = vld.sshfl [vmem:[%s3031_s26] sm:$0x33 pattern:$0x73516240] (!%p2454_p2)  ;;  %v672_v40 = vpack.i.b16 (!%p2454_p2), %v2768_v32, %v2767_v31  ;;  %v662_v42 = vshrl.u32 (!%p2454_p2), %v2766_v30, 16  ;;  %v673_v45 = vshrl.u32 (!%p2454_p2), %v2767_v31, 16 }
  0x69   : > { %v2770_v37 = vld.sshfl [vmem:[%s3031_s26 + $0x2] sm:$0x33 pattern:$0x73516240] (!%p2454_p2)  ;;  %v674_v46 = vshrl.u32 (!%p2454_p2), %v2768_v32, 16  ;;  %v578_v50 = vshrl.u32 (!%p2454_p2), %v2769_v36, 16 }
  0x6a   : > { %v755_v35 = vunpack.c.0.s8 (!%p2454_p2), %v754_v34  ;;  %v2771_v38 = vld.sshfl [vmem:[%s3031_s26 + $0x8] sm:$0x33 pattern:$0x73516240] (!%p2454_p2)  ;;  %v760_v47 = vcombine.low (!%p2454_p2), %v660_v39, %v672_v40  ;;  %v663_v48 = vpack.i.b16 (!%p2454_p2), %v662_v42, %v661_v41  ;;  %v576_v52 = vpack.i.b16 (!%p2454_p2), %v2770_v37, %v2769_v36 }
  0x6b   : > { %v2772_v43 = vld.sshfl [vmem:[%s3031_s26 + $0xa] sm:$0x33 pattern:$0x73516240] (!%p2454_p2)  ;;  %v675_v49 = vpack.i.b16 (!%p2454_p2), %v674_v46, %v673_v45  ;;  %v2866_v53 = vmov (!%p2454_p2), 0   ;;  %v579_v63 = vshrl.u32 (!%p2454_p2), %v2770_v37, 16 }
  0x6c   : > { %v3054_v44 = vsub.s32 %v755_v35, %v543_v28  ;;  %v630_v54 = vcombine.high %v2765_v29, %v2866_v53  ;;  %v639_v55 = vcombine.high %v2766_v30, %v2866_v53  ;;  %2697 = vset.pattern.permute.xlu0 %v2866_v53  ;;  %v592_v57 = vpack.i.b16 %v2772_v43, %v2771_v38 }
  0x6d   : > { %v825_v56 = vcombine.low %v663_v48, %v675_v49  ;;  %v648_v58 = vcombine.high %v2767_v31, %v2866_v53  ;;  %v657_v59 = vcombine.high %v2768_v32, %v2866_v53  ;;  %2698 = vset.pattern.permute.xlu1 %v2866_v53  ;;  %v606_v61 = vmul.bf16 1052065461, %v576_v52 }
  0x6e   : > { %v767_v51 = vrot.slane %v760_v47, %v3054_v44  ;;  %v666_v62 = vpack.i.b16 %v639_v55, %v630_v54  ;;  %v607_v1 = vmul.bf16 1052065461, %v592_v57  ;;  %v594_v3 = vshrl.u32 %v2771_v38, 16 }
  0x6f   : > { %v832_v0 = vrot.slane %v825_v56, %v3054_v44  ;;  %v678_v2 = vpack.i.b16 %v657_v59, %v648_v58  ;;  %v580_v4 = vpack.i.b16 %v579_v63, %v578_v50  ;;  %v595_v5 = vshrl.u32 %v2772_v43, 16 }
  0x70   : > { %v773_v60 = vsel %vm768_vm3, %v767_v51, 0  ;;  %v667_v6 = vshrl.u32 %v630_v54, 16  ;;  %v668_v7 = vshrl.u32 %v639_v55, 16  ;;  %v752_v9 = vcombine.low %v606_v61, %v607_v1 }
  0x71   : > { %2513 = vmatpush3.bf16.xpose.msra.mxu0 %v773_v60  ;;  %v837_v8 = vsel %vm768_vm3, %v832_v0, 0  ;;  %v889_v10 = vcombine.low %v666_v62, %v678_v2  ;;  %v679_v11 = vshrl.u32 %v648_v58, 16  ;;  %v596_v12 = vpack.i.b16 %v595_v5, %v594_v3  ;;  %v1007_v5 = vld [vmem:[#allocation2] sm:$0xff] }
  0x72   : > { %2524 = vmatprep.subr.bf16.mxu0 %v2863_v27  ;;  %2519 = vmatpush3.bf16.xpose.msra.mxu1 %v837_v8  ;;  %v608_v13 = vmul.bf16 1052065461, %v580_v4  ;;  %v669_v14 = vpack.i.b16 %v668_v7, %v667_v6  ;;  %v680_v15 = vshrl.u32 %v657_v59, 16  ;;  %v759_v16 = vrot.slane %v752_v9, %v3054_v44  ;;  %v3110_v8 = vld [vmem:[#allocation2 + $0x8] sm:$0xff] }
  0x73   : > { %v896_v17 = vrot.slane %v889_v10, %v3054_v44  ;;  %2530 = vmatprep.subr.bf16.mxu1 %v2863_v27  ;;  %v546_v18 = vcombine.high %v2769_v36, %v2866_v53  ;;  %v555_v19 = vcombine.high %v2770_v37, %v2866_v53  ;;  %v609_v20 = vmul.bf16 1052065461, %v596_v12 }
  0x74   : > { %v681_v21 = vpack.i.b16 %v680_v15, %v679_v11  ;;  %v564_v22 = vcombine.high %v2771_v38, %v2866_v53  ;;  %v573_v23 = vcombine.high %v2772_v43, %v2866_v53  ;;  %vm1095_vm4 = vcmask 7168  }
  0x75   : > { %v901_v24 = vsel %vm768_vm3, %v896_v17, 0  ;;  %v584_v25 = vpack.i.b16 %v555_v19, %v546_v18  ;;  %v586_v26 = vshrl.u32 %v546_v18, 16  ;;  %v587_v28 = vshrl.u32 %v555_v19, 16 }
  0x76   : > { %v817_v29 = vcombine.low %v608_v13, %v609_v20  ;;  %v953_v30 = vcombine.low %v669_v14, %v681_v21  ;;  %v600_v31 = vpack.i.b16 %v573_v23, %v564_v22  ;;  %v602_v32 = vshrl.u32 %v564_v22, 16  ;;  %v3116_v13 = vld [vmem:[#allocation2 + $0x10] sm:$0xff]  ;;  %v2775_v18 = vld.sshfl [vmem:[%s3035_s6 + $0x8] sm:$0x33 pattern:$0x73516240] }
  0x77   : > { %v610_v33 = vmul.bf16 1052065461, %v584_v25  ;;  %v588_v34 = vpack.i.b16 %v587_v28, %v586_v26  ;;  %v603_v35 = vshrl.u32 %v573_v23, 16  ;;  %v3130_v21 = vld [vmem:[#allocation2 + $0x18] sm:$0xff]  ;;  %vm1143_vm5 = vcmask 1043456  }
  0x78   : > { %2515 = vmatmul.mubr.msk.bf16.vlgmr.msra.gmra.mrb[0].mxu0 %vm768_vm3, %v759_v16  ;;  %v824_v36 = vrot.slane %v817_v29, %v3054_v44  ;;  %v960_v37 = vrot.slane %v953_v30, %v3054_v44  ;;  %v611_v38 = vmul.bf16 1052065461, %v600_v31  ;;  %v2773_v16 = vld.sshfl [vmem:[%s3035_s6] sm:$0x33 pattern:$0x73516240] }
  0x79   : > { %2525 = vmatpush3.bf16.xpose.msra.mxu0 %v901_v24  ;;  %2526 = vmatprep.mubr.msk.bf16.mxu0 %vm2864_vm2, %v2863_v27  ;;  %v604_v39 = vpack.i.b16 %v603_v35, %v602_v32  ;;  %v612_v40 = vmul.bf16 1052065461, %v588_v34  ;;  %v2774_v17 = vld.sshfl [vmem:[%s3035_s6 + $0x2] sm:$0x33 pattern:$0x73516240] }
  0x7a   : > { %2536 = vmatprep.subr.bf16.mxu0 %v2863_v27  ;;  %2521 = vmatmul.mubr.msk.bf16.vlgmr.msra.gmra.mrb[0].mxu1 %vm768_vm3, %v824_v36  ;;  %v965_v41 = vsel %vm768_vm3, %v960_v37, 0  ;;  %v881_v42 = vcombine.low %v610_v33, %v611_v38  ;;  %v2776_v20 = vld.sshfl [vmem:[%s3035_s6 + $0xa] sm:$0x33 pattern:$0x73516240]  ;;  %v728_v24 = vpack.i.b16 %v2774_v17, %v2773_v16  ;;  %v729_v28 = vshrl.u32 %v2773_v16, 16 }
  0x7b   : > { %2531 = vmatpush3.bf16.xpose.msra.mxu1 %v965_v41  ;;  %2532 = vmatprep.mubr.msk.bf16.mxu1 %vm2864_vm2, %v2863_v27  ;;  %v613_v43 = vmul.bf16 1052065461, %v604_v39  ;;  %v740_v26 = vpack.i.b16 %v2776_v20, %v2775_v18  ;;  %v730_v29 = vshrl.u32 %v2774_v17, 16  ;;  %v741_v30 = vshrl.u32 %v2775_v18, 16 }
  0x7c   : > { %v888_v45 = vrot.slane %v881_v42, %v3054_v44  ;;  %2542 = vmatprep.subr.bf16.mxu1 %v2863_v27  ;;  %v742_v31 = vshrl.u32 %v2776_v20, 16  ;;  %v698_v39 = vcombine.high %v2773_v16, %v2866_v53  ;;  %v716_v41 = vcombine.high %v2775_v18, %v2866_v53 }
  0x7d   : > { %v945_v46 = vcombine.low %v612_v40, %v613_v43  ;;  %v1132_v33 = vcombine.low %v728_v24, %v740_v26  ;;  %v731_v34 = vpack.i.b16 %v730_v29, %v729_v28  ;;  %v707_v40 = vcombine.high %v2774_v17, %v2866_v53 }
  0x7e   : > { %v743_v35 = vpack.i.b16 %v742_v31, %v741_v30  ;;  %v725_v43 = vcombine.high %v2776_v20, %v2866_v53 }
  0x7f   : > { %v952_v47 = vrot.slane %v945_v46, %v3054_v44  ;;  %v1139_v37 = vrot.slane %v1132_v33, %v3054_v44  ;;  %v734_v46 = vpack.i.b16 %v707_v40, %v698_v39  ;;  %v1072_v33 = vld [vmem:[#allocation3 + $0x8] sm:$0xff] }
  0x80   : > { %2527 = vmatmul.mubr.msk.bf16.vlgmr.msra.gmra.mrb[4].mxu0 %vm768_vm3, %v888_v45  ;;  %v1187_v38 = vcombine.low %v731_v34, %v743_v35 }
  0x81   : > { %2538 = vmatprep.mubr.msk.bf16.mxu0 %vm2864_vm2, %v2863_v27  ;;  %v1145_v42 = vsel %vm1143_vm5, %v1139_v37, 0 }
  0x82   : > { %2533 = vmatmul.mubr.msk.bf16.vlgmr.msra.gmra.mrb[4].mxu1 %vm768_vm3, %v952_v47  ;;  %2537 = vmatpush3.bf16.msra.mxu0 %v1145_v42  ;;  %v1194_v45 = vrot.slane %v1187_v38, %v3054_v44  ;;  %v746_v47 = vpack.i.b16 %v725_v43, %v716_v41 }
  0x83   : > { %2544 = vmatprep.mubr.msk.bf16.mxu1 %vm2864_vm2, %v2863_v27  ;;  %2548 = vmatprep.subr.bf16.mxu0 %v2863_v27 }
 0x14b   : > { %v3094_v48 = vpop.f32.mrb[0].mxu0 }
 0x14c   : > { %v2516_v49 = vpop.f32.mrb[1].mxu0  ;;  %v1011_v50 = vsel %vm768_vm3, %v3094_v48, -inf }
 0x14d   : > { %1012 = vmax.xlane.f32.xlu0 %v1011_v50  ;;  %v812_v51 = vpop.f32.mrb[2].mxu0  ;;  %v3098_v54 = vpop.f32.mrb[0].mxu1  ;;  %v1199_v49 = vsel %vm1143_vm5, %v1194_v45, 0  ;;  %v735_v50 = vshrl.u32 %v698_v39, 16  ;;  %v1100_v45 = vld [vmem:[#allocation4] sm:$0xff] }
 0x14e   : > { %v2517_v52 = vpop.f32.mrb[3].mxu0  ;;  %v2522_v55 = vpop.f32.mrb[1].mxu1  ;;  %v1014_v56 = vsel %vm768_vm3, %v3098_v54, -inf  ;;  %v736_v51 = vshrl.u32 %v707_v40, 16  ;;  %2543 = vmatpush3.bf16.msra.mxu1 %v1199_v49  ;;  %v1074_v40 = vld [vmem:[#allocation3 + $0x18] sm:$0xff] }
 0x14f   : > { %v876_v57 = vpop.f32.mrb[2].mxu1  ;;  %v747_v52 = vshrl.u32 %v716_v41, 16  ;;  %v1241_v55 = vcombine.low %v734_v46, %v746_v47  ;;  %2554 = vmatprep.subr.bf16.mxu1 %v2863_v27  ;;  %v1101_v47 = vld [vmem:[#allocation4 + $0x8] sm:$0xff] }
 0x150   : > { %v2523_v58 = vpop.f32.mrb[3].mxu1  ;;  %v737_v57 = vpack.i.b16 %v736_v51, %v735_v50 }
 0x151   : > { %1015 = vmax.xlane.f32.xlu0 %v1014_v56  ;;  %v748_v56 = vshrl.u32 %v725_v43, 16  ;;  %v1248_v53 = vrot.slane %v1241_v55, %v3054_v44 }
 0x153   : > { %v3102_v59 = vpop.f32.mrb[4].mxu0  ;;  %v749_v58 = vpack.i.b16 %v748_v56, %v747_v52 }
 0x154   : > { %v2528_v60 = vpop.f32.mrb[5].mxu0  ;;  %v1017_v61 = vsel %vm768_vm3, %v3102_v59, -inf }
 0x155   : > { %1018 = vmax.xlane.f32.xlu1 %v1017_v61  ;;  %v940_v62 = vpop.f32.mrb[6].mxu0  ;;  %v3106_v0 = vpop.f32.mrb[4].mxu1  ;;  %v1253_v60 = vsel %vm1143_vm5, %v1248_v53, 0  ;;  %v1295_v61 = vcombine.low %v737_v57, %v749_v58  ;;  %v1102_v53 = vld [vmem:[#allocation4 + $0x10] sm:$0xff] }
 0x156   : > { %v2529_v63 = vpop.f32.mrb[7].mxu0  ;;  %v2534_v1 = vpop.f32.mrb[5].mxu1  ;;  %v1020_v2 = vsel %vm768_vm3, %v3106_v0, -inf }
 0x157   : > { %v1004_v3 = vpop.f32.mrb[6].mxu1  ;;  %v1302_v62 = vrot.slane %v1295_v61, %v3054_v44 }
 0x158   : > { %v2535_v4 = vpop.f32.mrb[7].mxu1 }
 0x159   : > { %1021 = vmax.xlane.f32.xlu1 %v1020_v2  ;;  %v1307_v63 = vsel %vm1143_vm5, %v1302_v62, 0 }
 0x1da   : > { %v1013_v6 = vpop.xlane.xlu0 %1012 }
 0x1db   : > { %v1023_v7 = vmax.f32 %v1007_v5, %v1013_v6 }
 0x1dd   : > { %v1027_v9 = vsub.f32 %v1007_v5, %v1023_v7  ;;  %1357 = vst.msk [vmem:[#allocation2] sm:$0xff] %vm1095_vm4, %v1023_v7  ;;  %1041 = vperm.xlu0 %2697, %v1023_v7  }
 0x1de   : > { %v1016_v10 = vpop.xlane.xlu0 %1015 }
 0x1df   : > { %v1031_v11 = vmul.f32 1.442695, %v1027_v9  ;;  %v3114_v12 = vmax.f32 %v3110_v8, %v1016_v10 }
 0x1e1   : > { %2711 = vpow2.f32 %v1031_v11  ;;  %v1028_v14 = vsub.f32 %v3110_v8, %v3114_v12  ;;  %1358 = vst.msk [vmem:[#allocation2 + $0x8] sm:$0xff] %vm1095_vm4, %v3114_v12  ;;  %1046 = vperm.xlu1 %2698, %v3114_v12  }
 0x1e2   : > { %v1019_v15 = vpop.xlane.xlu1 %1018 }
 0x1e3   : > { %v3127_v19 = vmax.f32 %v3116_v13, %v1019_v15 }
 0x1e5   : > { %v1029_v22 = vsub.f32 %v3116_v13, %v3127_v19  ;;  %1359 = vst.msk [vmem:[#allocation2 + $0x10] sm:$0xff] %vm1095_vm4, %v3127_v19  ;;  %1051 = vperm.xlu1 %2698, %v3127_v19   ;;  %v1033_v19 = vmul.f32 1.442695, %v1028_v14  ;;  %v1071_v14 = vld [vmem:[#allocation3] sm:$0xff] }
 0x1e6   : > { %v1022_v23 = vpop.xlane.xlu1 %1021 }
 0x1e7   : > { %v3138_v25 = vmax.f32 %v3130_v21, %v1022_v23  ;;  %v1035_v18 = vmul.f32 1.442695, %v1029_v22 }
 0x1e9   : > { %v1030_v32 = vsub.f32 %v3130_v21, %v3138_v25  ;;  %1360 = vst.msk [vmem:[#allocation2 + $0x18] sm:$0xff] %vm1095_vm4, %v3138_v25  ;;  %1056 = vperm.xlu1 %2698, %v3138_v25   ;;  %v1073_v21 = vld [vmem:[#allocation3 + $0x10] sm:$0xff] }
 0x1eb   : > { %v3145_v36 = vpop.eup %2711  ;;  %v1037_v29 = vmul.f32 1.442695, %v1030_v32 }
 0x1ec   : > { %v1075_v30 = vmul.f32 %v3145_v36, %v1071_v14 }
 0x1ed   : > { %1106 = vperm.xlu1 %2698, %v3145_v36  }
 0x25c   : > { %v1042_v1 = vpop.permute.xlu0 %1041 }
 0x25d   : > { %v1059_v2 = vsub.f32 %v3094_v48, %v1042_v1 }
 0x25f   : > { %v1063_v3 = vmul.f32 1.442695, %v1059_v2  ;;  %v1103_v2 = vld [vmem:[#allocation4 + $0x18] sm:$0xff] }
 0x260   : > { %v1047_v4 = vpop.permute.xlu1 %1046 }
 0x261   : > { %2713 = vpow2.f32 %v1063_v3  ;;  %v1060_v5 = vsub.f32 %v3098_v54, %v1047_v4 }
 0x263   : > { %v1065_v6 = vmul.f32 1.442695, %v1060_v5 }
 0x264   : > { %v1052_v7 = vpop.permute.xlu1 %1051 }
 0x265   : > { %2715 = vpow2.f32 %v1065_v6  ;;  %v1061_v9 = vsub.f32 %v3102_v59, %v1052_v7 }
 0x267   : > { %v1067_v10 = vmul.f32 1.442695, %v1061_v9 }
 0x268   : > { %v1057_v11 = vpop.permute.xlu1 %1056 }
 0x269   : > { %2717 = vpow2.f32 %v1067_v10  ;;  %v1062_v44 = vsub.f32 %v3106_v0, %v1057_v11 }
 0x26b   : > { %v2714_v15 = vpop.eup %2713  ;;  %v1069_v16 = vmul.f32 1.442695, %v1062_v44 }
 0x26c   : > { %v1079_v17 = vsel %vm768_vm3, %v2714_v15, 0.0  ;;  %v1128_v48 = vpack.c.bf16 %v2714_v15, %v2714_v15  ;;  %v1107_v12 = vpop.permute.xlu1 %1106 }
 0x26d   : > { %2719 = vpow2.f32 %v1069_v16  ;;  %1080 = vadd.xlane.f32.xlu1 %v1079_v17  ;;  %v1124_v46 = vmul.f32 %v1107_v12, %v1100_v45 }
 0x26e   : > { %2539 = vmatmul.mubr.msk.bf16.vlgmr.msra.gmra.mrb[8].mxu0 %vm768_vm3, %v1128_v48  ;;  %2721 = vpow2.f32 %v1035_v18 }
 0x26f   : > { %v2716_v54 = vpop.eup %2715  ;;  %2549 = vmatpush3.bf16.msra.mxu0 %v1253_v60  ;;  %2550 = vmatprep.mubr.msk.bf16.mxu0 %vm2864_vm2, %v2863_v27  ;;  %2723 = vpow2.f32 %v1033_v19 }
 0x270   : > { %v1082_v59 = vsel %vm768_vm3, %v2716_v54, 0.0  ;;  %v1129_v0 = vpack.c.bf16 %v2716_v54, %v2716_v54  ;;  %2725 = vpow2.f32 %v1037_v29 }
 0x271   : > { %1083 = vadd.xlane.f32.xlu0 %v1082_v59 }
 0x272   : > { %2545 = vmatmul.mubr.msk.bf16.vlgmr.msra.gmra.mrb[8].mxu1 %vm768_vm3, %v1129_v0 }
 0x273   : > { %v2718_v20 = vpop.eup %2717  ;;  %2555 = vmatpush3.bf16.msra.mxu1 %v1307_v63  ;;  %2556 = vmatprep.mubr.msk.bf16.mxu1 %vm2864_vm2, %v2863_v27 }
 0x274   : > { %v1130_v23 = vpack.c.bf16 %v2718_v20, %v2718_v20  ;;  %v1085_v28 = vsel %vm768_vm3, %v2718_v20, 0.0 }
 0x276   : > { %2551 = vmatmul.mubr.msk.bf16.vlgmr.msra.gmra.mrb[12].mxu0 %vm768_vm3, %v1130_v23 }
 0x277   : > { %v2720_v13 = vpop.eup %2719 }
 0x278   : > { %v1131_v22 = vpack.c.bf16 %v2720_v13, %v2720_v13  ;;  %v2722_v24 = vpop.eup %2721  ;;  %v1088_v27 = vsel %vm768_vm3, %v2720_v13, 0.0 }
 0x279   : > { %v2724_v26 = vpop.eup %2723  ;;  %v1077_v25 = vmul.f32 %v2722_v24, %v1073_v21 }
 0x27a   : > { %2557 = vmatmul.mubr.msk.bf16.vlgmr.msra.gmra.mrb[12].mxu1 %vm768_vm3, %v1131_v22  ;;  %v2726_v8 = vpop.eup %2725  ;;  %v1076_v35 = vmul.f32 %v2724_v26, %v1072_v33 }
 0x27b   : > { %v1078_v42 = vmul.f32 %v2726_v8, %v1074_v40 }
 0x27e   : > { %1116 = vperm.xlu1 %2698, %v2722_v24  }
 0x287   : > { %1111 = vperm.xlu0 %2697, %v2724_v26  }
 0x2a2   : > { %1086 = vadd.xlane.f32.xlu1 %v1085_v28 }
 0x2a6   : > { %1089 = vadd.xlane.f32.xlu1 %v1088_v27 }
 0x2b7   : > { %1121 = vperm.xlu1 %2698, %v2726_v8  }
 0x2fa   : > { %v1081_v31 = vpop.xlane.xlu1 %1080 }
 0x2fb   : > { %v1091_v34 = vadd.f32 %v1081_v31, %v1075_v30 }
 0x2fd   : > { %1096 = vst.msk [vmem:[#allocation3] sm:$0xff] %vm1095_vm4, %v1091_v34 }
 0x2fe   : > { %v1084_v37 = vpop.xlane.xlu0 %1083  ;;  %v1117_v39 = vpop.permute.xlu1 %1116 }
 0x2ff   : > { %v1092_v38 = vadd.f32 %v1084_v37, %v1076_v35  ;;  %v1126_v63 = vmul.f32 %v1117_v39, %v1102_v53 }
 0x301   : > { %1097 = vst.msk [vmem:[#allocation3 + $0x8] sm:$0xff] %vm1095_vm4, %v1092_v38 }
 0x306   : > { %v1112_v49 = vpop.permute.xlu0 %1111 }
 0x307   : > { %v1125_v56 = vmul.f32 %v1112_v49, %v1101_v47 }
 0x32f   : > { %v1087_v32 = vpop.xlane.xlu1 %1086 }
 0x330   : > { %v1093_v41 = vadd.f32 %v1087_v32, %v1077_v25 }
 0x332   : > { %1098 = vst.msk [vmem:[#allocation3 + $0x10] sm:$0xff] %vm1095_vm4, %v1093_v41 }
 0x333   : > { %v1090_v36 = vpop.xlane.xlu1 %1089 }
 0x334   : > { %v1094_v43 = vadd.f32 %v1090_v36, %v1078_v42 }
 0x336   : > { %1099 = vst.msk [vmem:[#allocation3 + $0x18] sm:$0xff] %vm1095_vm4, %v1094_v43 }
 0x337   : > { %v1122_v3 = vpop.permute.xlu1 %1121 }
 0x338   : > { %v1127_v9 = vmul.f32 %v1122_v3, %v1103_v2 }
 0x341   : > { %v1181_v50 = vpop.f32.mrb[8].mxu0 }
 0x342   : > { %v1349_v51 = vadd.f32 %v1181_v50, %v1124_v46  ;;  %v2540_v52 = vpop.f32.mrb[9].mxu0 }
 0x343   : > { %v1184_v55 = vpop.f32.mrb[10].mxu0 }
 0x344   : > { %1353 = vst.msk [vmem:[#allocation4] sm:$0xff] %vm768_vm3, %v1349_v51  ;;  %v2541_v57 = vpop.f32.mrb[11].mxu0 }
 0x345   : > { %v1235_v58 = vpop.f32.mrb[8].mxu1 }
 0x346   : > { %v1350_v60 = vadd.f32 %v1235_v58, %v1125_v56  ;;  %v2546_v61 = vpop.f32.mrb[9].mxu1 }
 0x347   : > { %v1238_v62 = vpop.f32.mrb[10].mxu1 }
 0x348   : > { %1354 = vst.msk [vmem:[#allocation4 + $0x8] sm:$0xff] %vm768_vm3, %v1350_v60  ;;  %v2547_v1 = vpop.f32.mrb[11].mxu1 }
 0x349   : > { %v1289_v4 = vpop.f32.mrb[12].mxu0 }
 0x34a   : > { %v1351_v5 = vadd.f32 %v1289_v4, %v1126_v63  ;;  %v2552_v6 = vpop.f32.mrb[13].mxu0 }
 0x34b   : > { %v1292_v7 = vpop.f32.mrb[14].mxu0 }
 0x34c   : > { %1355 = vst.msk [vmem:[#allocation4 + $0x10] sm:$0xff] %vm768_vm3, %v1351_v5  ;;  %v2553_v10 = vpop.f32.mrb[15].mxu0 }
 0x34d   : > { %v1343_v11 = vpop.f32.mrb[12].mxu1 }
 0x34e   : > { %v1352_v44 = vadd.f32 %v1343_v11, %v1127_v9  ;;  %v2558_v15 = vpop.f32.mrb[13].mxu1 }
 0x34f   : > { %v1346_v16 = vpop.f32.mrb[14].mxu1 }
 0x350   : > { %1356 = vst.msk [vmem:[#allocation4 + $0x18] sm:$0xff] %vm768_vm3, %v1352_v44  ;;  %v2559_v17 = vpop.f32.mrb[15].mxu1 }
 0x351 PF: > { %p2463_p3 = scmp.ne.s32.totalorder %s3021_s16, %s3018_s30 }
 0x352   : > { %v1377_v48 = vlaneseq (!%p2463_p3)  ;;  %v2867_v54 = vmov (!%p2463_p3), 0.0   ;;  %v2777_v59 = vld.sshfl [vmem:[%s3033_s22] sm:$0x33 pattern:$0x73516240] (!%p2463_p3)  ;;  %vm2868_vm6 = vmmov (!%p2463_p3), 0  }
 0x353   : > { %1364 = sbr.rel (%p2463_p3) target bundleno = 1795 (0x703), region = 167  ;;  %2560 = vmatprep.subr.bf16.mxu0 (!%p2463_p3), %v2867_v54  ;;  %2566 = vmatprep.subr.bf16.mxu1 (!%p2463_p3), %v2867_v54  ;;  %v2778_v0 = vld.sshfl [vmem:[%s3033_s22 + $0x2] sm:$0x33 pattern:$0x73516240] (!%p2463_p3)  ;;  %vm1603_vm7 = vcmask (!%p2463_p3), 64512  }
 0x354   : > { %v3201_v18 = vshrl.u32 (!%p2463_p3), %v1377_v48, 7  ;;  %2562 = vmatprep.mubr.msk.bf16.mxu0 (!%p2463_p3), %vm2868_vm6, %v2867_v54  ;;  %2568 = vmatprep.mubr.msk.bf16.mxu1 (!%p2463_p3), %vm2868_vm6, %v2867_v54  ;;  %v2779_v20 = vld.sshfl [vmem:[%s3033_s22 + $0x8] sm:$0x33 pattern:$0x73516240] (!%p2463_p3)  ;;  %v1495_v27 = vpack.i.b16 (!%p2463_p3), %v2778_v0, %v2777_v59  ;;  %v1496_v8 = vshrl.u32 (!%p2463_p3), %v2777_v59, 16 }
 0x355   : > { %v2780_v23 = vld.sshfl [vmem:[%s3033_s22 + $0xa] sm:$0x33 pattern:$0x73516240] (!%p2463_p3)  ;;  %v2869_v13 = vmov (!%p2463_p3), 1983009808  }
 0x356   : > { %v1589_v19 = vunpack.c.l.s4 (!%p2463_p3), %v2869_v13  ;;  %v2781_v24 = vld.sshfl [vmem:[%s3031_s26] sm:$0x33 pattern:$0x73516240] (!%p2463_p3)  ;;  %v1507_v29 = vpack.i.b16 (!%p2463_p3), %v2780_v23, %v2779_v20  ;;  %v1497_v12 = vshrl.u32 (!%p2463_p3), %v2778_v0, 16  ;;  %v1508_v31 = vshrl.u32 (!%p2463_p3), %v2779_v20, 16 }
 0x357   : > { %v2782_v26 = vld.sshfl [vmem:[%s3031_s26 + $0x2] sm:$0x33 pattern:$0x73516240] (!%p2463_p3)  ;;  %v1509_v33 = vshrl.u32 (!%p2463_p3), %v2780_v23, 16  ;;  %v1413_v38 = vshrl.u32 (!%p2463_p3), %v2781_v24, 16 }
 0x358   : > { %v1590_v22 = vunpack.c.0.s8 (!%p2463_p3), %v1589_v19  ;;  %v2783_v28 = vld.sshfl [vmem:[%s3031_s26 + $0x8] sm:$0x33 pattern:$0x73516240] (!%p2463_p3)  ;;  %v1595_v34 = vcombine.low (!%p2463_p3), %v1495_v27, %v1507_v29  ;;  %v1498_v35 = vpack.i.b16 (!%p2463_p3), %v1497_v12, %v1496_v8  ;;  %v1411_v21 = vpack.i.b16 (!%p2463_p3), %v2782_v26, %v2781_v24  ;;  %s2871_s28 = smov (!%p2463_p3), 8   ;;  %s2872_s10 = smov (!%p2463_p3), 16  }
 0x359   : > { %v2784_v14 = vld.sshfl [vmem:[%s3031_s26 + $0xa] sm:$0x33 pattern:$0x73516240] (!%p2463_p3)  ;;  %v1510_v37 = vpack.i.b16 (!%p2463_p3), %v1509_v33, %v1508_v31  ;;  %v2870_v25 = vmov (!%p2463_p3), 0   ;;  %v1414_v49 = vshrl.u32 (!%p2463_p3), %v2782_v26, 16 }
 0x35a   : > { %v3216_v30 = vsub.s32 %v1590_v22, %v3201_v18  ;;  %v1465_v32 = vcombine.high %v2777_v59, %v2870_v25  ;;  %v1474_v40 = vcombine.high %v2778_v0, %v2870_v25  ;;  %2727 = vset.pattern.permute.xlu0 %v2870_v25  ;;  %v1427_v42 = vpack.i.b16 %v2784_v14, %v2783_v28  ;;  %s2873_s7 = smov 24  }
 0x35b   : > { %v1660_v41 = vcombine.low %v1498_v35, %v1510_v37  ;;  %v1483_v36 = vcombine.high %v2779_v20, %v2870_v25  ;;  %v1492_v43 = vcombine.high %v2780_v23, %v2870_v25  ;;  %2728 = vset.pattern.permute.xlu1 %v2870_v25  ;;  %v1441_v46 = vmul.bf16 1052065461, %v1411_v21 }
 0x35c   : > { %v1602_v39 = vrot.slane %v1595_v34, %v3216_v30  ;;  %v1501_v47 = vpack.i.b16 %v1474_v40, %v1465_v32  ;;  %v1442_v51 = vmul.bf16 1052065461, %v1427_v42  ;;  %v1429_v55 = vshrl.u32 %v2783_v28, 16 }
 0x35d   : > { %v1667_v50 = vrot.slane %v1660_v41, %v3216_v30  ;;  %v1513_v52 = vpack.i.b16 %v1492_v43, %v1483_v36  ;;  %v1415_v56 = vpack.i.b16 %v1414_v49, %v1413_v38  ;;  %v1430_v57 = vshrl.u32 %v2784_v14, 16 }
 0x35e   : > { %v1608_v45 = vsel %vm1603_vm7, %v1602_v39, 0  ;;  %v1502_v53 = vshrl.u32 %v1465_v32, 16  ;;  %v1503_v58 = vshrl.u32 %v1474_v40, 16  ;;  %v1587_v61 = vcombine.low %v1441_v46, %v1442_v51 }
 0x35f   : > { %2561 = vmatpush3.bf16.xpose.msra.mxu0 %v1608_v45  ;;  %v1672_v60 = vsel %vm1603_vm7, %v1667_v50, 0  ;;  %v1724_v62 = vcombine.low %v1501_v47, %v1513_v52  ;;  %v1514_v63 = vshrl.u32 %v1483_v36, 16  ;;  %v1431_v1 = vpack.i.b16 %v1430_v57, %v1429_v55 }
 0x360   : > { %2572 = vmatprep.subr.bf16.mxu0 %v2867_v54  ;;  %2567 = vmatpush3.bf16.xpose.msra.mxu1 %v1672_v60  ;;  %v1443_v2 = vmul.bf16 1052065461, %v1415_v56  ;;  %v1504_v3 = vpack.i.b16 %v1503_v58, %v1502_v53  ;;  %v1515_v4 = vshrl.u32 %v1492_v43, 16  ;;  %v1594_v5 = vrot.slane %v1587_v61, %v3216_v30 }
 0x361   : > { %v1731_v6 = vrot.slane %v1724_v62, %v3216_v30  ;;  %2578 = vmatprep.subr.bf16.mxu1 %v2867_v54  ;;  %v1381_v7 = vcombine.high %v2781_v24, %v2870_v25  ;;  %v1390_v9 = vcombine.high %v2782_v26, %v2870_v25  ;;  %v1444_v10 = vmul.bf16 1052065461, %v1431_v1 }
 0x362   : > { %v1516_v11 = vpack.i.b16 %v1515_v4, %v1514_v63  ;;  %v1399_v44 = vcombine.high %v2783_v28, %v2870_v25  ;;  %v1408_v15 = vcombine.high %v2784_v14, %v2870_v25  ;;  %v1845_v38 = vand.u32 127, %v1377_v48  ;;  %v3282_v63 = vld [vmem:[#allocation2] sm:$0xff] }
 0x363   : > { %v1736_v16 = vsel %vm1603_vm7, %v1731_v6, 0  ;;  %v1419_v17 = vpack.i.b16 %v1390_v9, %v1381_v7  ;;  %v1421_v59 = vshrl.u32 %v1381_v7, 16  ;;  %v1422_v0 = vshrl.u32 %v1390_v9, 16  ;;  %v3297_v6 = vld [vmem:[#allocation2 + $0x10] sm:$0xff] }
 0x364   : > { %v1652_v20 = vcombine.low %v1443_v2, %v1444_v10  ;;  %v1788_v23 = vcombine.low %v1504_v3, %v1516_v11  ;;  %v1435_v13 = vpack.i.b16 %v1408_v15, %v1399_v44  ;;  %v1437_v19 = vshrl.u32 %v1399_v44, 16  ;;  %v2785_v10 = vld.sshfl [vmem:[%s3035_s6] sm:$0x33 pattern:$0x73516240] }
 0x365   : > { %v1445_v22 = vmul.bf16 1052065461, %v1419_v17  ;;  %v1423_v24 = vpack.i.b16 %v1422_v0, %v1421_v59  ;;  %v1438_v26 = vshrl.u32 %v1408_v15, 16  ;;  %vm1846_vm8 = vcmp.ge.s32.totalorder %v3201_v18, %v1845_v38  ;;  %v3287_v18 = vld [vmem:[#allocation2 + $0x8] sm:$0xff]  ;;  %v3311_v17 = vld [vmem:[#allocation2 + $0x18] sm:$0xff] }
 0x366   : > { %2563 = vmatmul.mubr.msk.bf16.vlgmr.msra.gmra.mrb[0].mxu0 %vm1603_vm7, %v1594_v5  ;;  %v1659_v28 = vrot.slane %v1652_v20, %v3216_v30  ;;  %v1795_v27 = vrot.slane %v1788_v23, %v3216_v30  ;;  %v1446_v29 = vmul.bf16 1052065461, %v1435_v13  ;;  %vm1941_vm9 = vcmask 7168  }
 0x367   : > { %2573 = vmatpush3.bf16.xpose.msra.mxu0 %v1736_v16  ;;  %2574 = vmatprep.mubr.msk.bf16.mxu0 %vm2868_vm6, %v2867_v54  ;;  %v1439_v8 = vpack.i.b16 %v1438_v26, %v1437_v19  ;;  %v1447_v12 = vmul.bf16 1052065461, %v1423_v24  ;;  %v2786_v11 = vld.sshfl [vmem:[%s3035_s6 + $0x2] sm:$0x33 pattern:$0x73516240] }
 0x368   : > { %2584 = vmatprep.subr.bf16.mxu0 %v2867_v54  ;;  %2569 = vmatmul.mubr.msk.bf16.vlgmr.msra.gmra.mrb[0].mxu1 %vm1603_vm7, %v1659_v28  ;;  %v1800_v14 = vsel %vm1603_vm7, %v1795_v27, 0  ;;  %v1716_v31 = vcombine.low %v1445_v22, %v1446_v29  ;;  %v2787_v44 = vld.sshfl [vmem:[%s3035_s6 + $0x8] sm:$0x33 pattern:$0x73516240]  ;;  %v1563_v20 = vpack.i.b16 %v2786_v11, %v2785_v10  ;;  %v1564_v19 = vshrl.u32 %v2785_v10, 16 }
 0x369   : > { %2579 = vmatpush3.bf16.xpose.msra.mxu1 %v1800_v14  ;;  %2580 = vmatprep.mubr.msk.bf16.mxu1 %vm2868_vm6, %v2867_v54  ;;  %v1448_v33 = vmul.bf16 1052065461, %v1439_v8  ;;  %v2788_v16 = vld.sshfl [vmem:[%s3035_s6 + $0xa] sm:$0x33 pattern:$0x73516240] }
 0x36a   : > { %v1723_v34 = vrot.slane %v1716_v31, %v3216_v30  ;;  %2590 = vmatprep.subr.bf16.mxu1 %v2867_v54  ;;  %v1575_v13 = vpack.i.b16 %v2788_v16, %v2787_v44  ;;  %v1565_v22 = vshrl.u32 %v2786_v11, 16  ;;  %v1576_v24 = vshrl.u32 %v2787_v44, 16 }
 0x36b   : > { %v1780_v35 = vcombine.low %v1447_v12, %v1448_v33  ;;  %v1577_v26 = vshrl.u32 %v2788_v16, 16  ;;  %vm1989_vm10 = vcmask 1043456   ;;  %v1533_v31 = vcombine.high %v2785_v10, %v2870_v25 }
 0x36c   : > { %v1978_v27 = vcombine.low %v1563_v20, %v1575_v13  ;;  %v1566_v29 = vpack.i.b16 %v1565_v22, %v1564_v19  ;;  %v1542_v33 = vcombine.high %v2786_v11, %v2870_v25  ;;  %vm2223_vm11 = vcmask 60416  }
 0x36d   : > { %v1787_v37 = vrot.slane %v1780_v35, %v3216_v30  ;;  %v1578_v8 = vpack.i.b16 %v1577_v26, %v1576_v24  ;;  %vm2240_vm12 = vcmask 126016   ;;  %vm2257_vm13 = vcmask 191616  }
 0x36e   : > { %2575 = vmatmul.mubr.msk.bf16.vlgmr.msra.gmra.mrb[4].mxu0 %vm1603_vm7, %v1723_v34  ;;  %v1985_v12 = vrot.slane %v1978_v27, %v3216_v30  ;;  %v1551_v34 = vcombine.high %v2787_v44, %v2870_v25  ;;  %vm2274_vm14 = vcmask 257216  }
 0x36f   : > { %2586 = vmatprep.mubr.msk.bf16.mxu0 %vm2868_vm6, %v2867_v54  ;;  %v2033_v14 = vcombine.low %v1566_v29, %v1578_v8 }
 0x370   : > { %2581 = vmatmul.mubr.msk.bf16.vlgmr.msra.gmra.mrb[4].mxu1 %vm1603_vm7, %v1787_v37  ;;  %v1991_v35 = vsel %vm1989_vm10, %v1985_v12, 0  ;;  %v1560_v37 = vcombine.high %v2788_v16, %v2870_v25 }
 0x371   : > { %2592 = vmatprep.mubr.msk.bf16.mxu1 %vm2868_vm6, %v2867_v54  ;;  %2585 = vmatpush3.bf16.msra.mxu0 %v1991_v35  ;;  %v2040_v38 = vrot.slane %v2033_v14, %v3216_v30  ;;  %v1917_v35 = vld [vmem:[#allocation3] sm:$0xff] }
 0x372   : > { %2596 = vmatprep.subr.bf16.mxu0 %v2867_v54 }
 0x439   : > { %v1644_v39 = vpop.f32.mrb[0].mxu0 }
 0x43a   : > { %v3260_v21 = vsel %vm1846_vm8, %v1644_v39, -1e+30  ;;  %v2564_v32 = vpop.f32.mrb[1].mxu0  ;;  %v1569_v39 = vpack.i.b16 %v1542_v33, %v1533_v31 }
 0x43b   : > { %v1647_v40 = vpop.f32.mrb[2].mxu0  ;;  %v1857_v41 = vsel %vm1603_vm7, %v3260_v21, -inf  ;;  %v1708_v36 = vpop.f32.mrb[0].mxu1  ;;  %v1581_v32 = vpack.i.b16 %v1560_v37, %v1551_v34 }
 0x43c   : > { %1858 = vmax.xlane.f32.xlu0 %v1857_v41  ;;  %v2565_v42 = vpop.f32.mrb[3].mxu0  ;;  %v3266_v43 = vsel %vm1846_vm8, %v1708_v36, -1e+30  ;;  %v2570_v48 = vpop.f32.mrb[1].mxu1  ;;  %v2045_v40 = vsel %vm1989_vm10, %v2040_v38, 0  ;;  %v1570_v41 = vshrl.u32 %v1533_v31, 16 }
 0x43d   : > { %v1711_v45 = vpop.f32.mrb[2].mxu1  ;;  %v1860_v46 = vsel %vm1603_vm7, %v3266_v43, -inf  ;;  %v1571_v42 = vshrl.u32 %v1542_v33, 16  ;;  %v1582_v36 = vshrl.u32 %v1551_v34, 16  ;;  %2591 = vmatpush3.bf16.msra.mxu1 %v2045_v40  ;;  %v2087_v48 = vcombine.low %v1569_v39, %v1581_v32 }
 0x43e   : > { %v2571_v47 = vpop.f32.mrb[3].mxu1  ;;  %v1583_v45 = vshrl.u32 %v1560_v37, 16  ;;  %2602 = vmatprep.subr.bf16.mxu1 %v2867_v54 }
 0x43f   : > { %v2094_v25 = vrot.slane %v2087_v48, %v3216_v30 }
 0x440   : > { %1861 = vmax.xlane.f32.xlu0 %v1860_v46  ;;  %v1572_v46 = vpack.i.b16 %v1571_v42, %v1570_v41  ;;  %v1584_v47 = vpack.i.b16 %v1583_v45, %v1582_v36  ;;  %v1947_v45 = vld [vmem:[#allocation4 + $0x8] sm:$0xff] }
 0x441   : > { %v1772_v49 = vpop.f32.mrb[4].mxu0 }
 0x442   : > { %v3272_v50 = vsel %vm1846_vm8, %v1772_v49, -1e+30  ;;  %v2576_v51 = vpop.f32.mrb[5].mxu0  ;;  %v2099_v49 = vsel %vm1989_vm10, %v2094_v25, 0 }
 0x443   : > { %v1775_v52 = vpop.f32.mrb[6].mxu0  ;;  %v1863_v55 = vsel %vm1603_vm7, %v3272_v50, -inf  ;;  %v1836_v57 = vpop.f32.mrb[4].mxu1  ;;  %v2141_v51 = vcombine.low %v1572_v46, %v1584_v47 }
 0x444   : > { %1864 = vmax.xlane.f32.xlu1 %v1863_v55  ;;  %v2577_v56 = vpop.f32.mrb[7].mxu0  ;;  %v3278_v53 = vsel %vm1846_vm8, %v1836_v57, -1e+30  ;;  %v2582_v58 = vpop.f32.mrb[5].mxu1 }
 0x445   : > { %v1839_v60 = vpop.f32.mrb[6].mxu1  ;;  %v1866_v61 = vsel %vm1603_vm7, %v3278_v53, -inf  ;;  %v2148_v52 = vrot.slane %v2141_v51, %v3216_v30 }
 0x446   : > { %v2583_v62 = vpop.f32.mrb[7].mxu1 }
 0x447   : > { %v2153_v55 = vsel %vm1989_vm10, %v2148_v52, 0 }
 0x448   : > { %1867 = vmax.xlane.f32.xlu1 %v1866_v61 }
 0x4c9   : > { %v1859_v1 = vpop.xlane.xlu0 %1858 }
 0x4ca   : > { %v3285_v2 = vmax.f32 %v3282_v63, %v1859_v1 }
 0x4cc   : > { %v1873_v3 = vsub.f32 %v3282_v63, %v3285_v2  ;;  %2203 = vst.msk [vmem:[#allocation2] sm:$0xff] %vm1941_vm9, %v3285_v2  ;;  %1887 = vperm.xlu0 %2727, %v3285_v2  }
 0x4cd   : > { %v1862_v4 = vpop.xlane.xlu0 %1861 }
 0x4ce   : > { %v3295_v5 = vmax.f32 %v3287_v18, %v1862_v4 }
 0x4d0   : > { %v1874_v7 = vsub.f32 %v3287_v18, %v3295_v5  ;;  %2204 = vst.msk [vmem:[#allocation2 + $0x8] sm:$0xff] %vm1941_vm9, %v3295_v5  ;;  %1892 = vperm.xlu1 %2728, %v3295_v5  }
 0x4d1   : > { %v1865_v9 = vpop.xlane.xlu1 %1864 }
 0x4d2   : > { %v3308_v15 = vmax.f32 %v3297_v6, %v1865_v9 }
 0x4d4   : > { %v1875_v59 = vsub.f32 %v3297_v6, %v3308_v15  ;;  %2205 = vst.msk [vmem:[#allocation2 + $0x10] sm:$0xff] %vm1941_vm9, %v3308_v15  ;;  %1897 = vperm.xlu1 %2728, %v3308_v15   ;;  %v1877_v15 = vmul.f32 1.442695, %v1873_v3 }
 0x4d5   : > { %v1868_v0 = vpop.xlane.xlu1 %1867 }
 0x4d6   : > { %v3319_v23 = vmax.f32 %v3311_v17, %v1868_v0  ;;  %v1881_v24 = vmul.f32 1.442695, %v1875_v59  ;;  %v1918_v59 = vld [vmem:[#allocation3 + $0x8] sm:$0xff] }
 0x4d8   : > { %v1876_v28 = vsub.f32 %v3311_v17, %v3319_v23  ;;  %2206 = vst.msk [vmem:[#allocation2 + $0x18] sm:$0xff] %vm1941_vm9, %v3319_v23  ;;  %1902 = vperm.xlu1 %2728, %v3319_v23  }
 0x4da   : > { %v1883_v27 = vmul.f32 1.442695, %v1876_v28  ;;  %v1920_v28 = vld [vmem:[#allocation3 + $0x18] sm:$0xff] }
 0x54b   : > { %v1888_v56 = vpop.permute.xlu0 %1887 }
 0x54c   : > { %v1905_v57 = vsub.f32 %v3260_v21, %v1888_v56 }
 0x54e   : > { %v1909_v58 = vmul.f32 1.442695, %v1905_v57 }
 0x54f   : > { %v1893_v60 = vpop.permute.xlu1 %1892 }
 0x550   : > { %2741 = vpow2.f32 %v1909_v58  ;;  %v1906_v61 = vsub.f32 %v3266_v43, %v1893_v60 }
 0x552   : > { %v1911_v62 = vmul.f32 1.442695, %v1906_v61 }
 0x553   : > { %v1898_v1 = vpop.permute.xlu1 %1897 }
 0x554   : > { %2743 = vpow2.f32 %v1911_v62  ;;  %v1907_v4 = vsub.f32 %v3272_v50, %v1898_v1 }
 0x556   : > { %v1913_v9 = vmul.f32 1.442695, %v1907_v4  ;;  %v1949_v4 = vld [vmem:[#allocation4 + $0x18] sm:$0xff] }
 0x557   : > { %v1903_v10 = vpop.permute.xlu1 %1902 }
 0x558   : > { %2745 = vpow2.f32 %v1913_v9  ;;  %v1908_v30 = vsub.f32 %v3278_v53, %v1903_v10 }
 0x55a   : > { %v2742_v11 = vpop.eup %2741  ;;  %v1915_v44 = vmul.f32 1.442695, %v1908_v30 }
 0x55b   : > { %v1974_v16 = vpack.c.bf16 %v2742_v11, %v2742_v11  ;;  %v1925_v26 = vsel %vm1603_vm7, %v2742_v11, 0.0 }
 0x55c   : > { %2747 = vpow2.f32 %v1915_v44 }
 0x55d   : > { %2587 = vmatmul.mubr.msk.bf16.vlgmr.msra.gmra.mrb[8].mxu0 %vm1603_vm7, %v1974_v16  ;;  %2749 = vpow2.f32 %v1881_v24 }
 0x55e   : > { %v2744_v21 = vpop.eup %2743  ;;  %2597 = vmatpush3.bf16.msra.mxu0 %v2099_v49  ;;  %2598 = vmatprep.mubr.msk.bf16.mxu0 %vm2868_vm6, %v2867_v54 }
 0x55f   : > { %v1928_v43 = vsel %vm1603_vm7, %v2744_v21, 0.0  ;;  %v1975_v0 = vpack.c.bf16 %v2744_v21, %v2744_v21 }
 0x560   : > { %1929 = vadd.xlane.f32.xlu1 %v1928_v43 }
 0x561   : > { %2593 = vmatmul.mubr.msk.bf16.vlgmr.msra.gmra.mrb[8].mxu1 %vm1603_vm7, %v1975_v0 }
 0x562   : > { %v2746_v50 = vpop.eup %2745  ;;  %2603 = vmatpush3.bf16.msra.mxu1 %v2153_v55  ;;  %2604 = vmatprep.mubr.msk.bf16.mxu1 %vm2868_vm6, %v2867_v54  ;;  %v1879_v54 = vmul.f32 1.442695, %v1874_v7  ;;  %v1919_v7 = vld [vmem:[#allocation3 + $0x10] sm:$0xff] }
 0x563   : > { %v1931_v53 = vsel %vm1603_vm7, %v2746_v50, 0.0  ;;  %v1976_v20 = vpack.c.bf16 %v2746_v50, %v2746_v50  ;;  %v1948_v55 = vld [vmem:[#allocation4 + $0x10] sm:$0xff] }
 0x564   : > { %1932 = vadd.xlane.f32.xlu0 %v1931_v53  ;;  %2751 = vpow2.f32 %v1879_v54 }
 0x565   : > { %2599 = vmatmul.mubr.msk.bf16.vlgmr.msra.gmra.mrb[12].mxu0 %vm1603_vm7, %v1976_v20  ;;  %2753 = vpow2.f32 %v1883_v27 }
 0x566   : > { %v2748_v13 = vpop.eup %2747  ;;  %2755 = vpow2.f32 %v1877_v15 }
 0x567   : > { %v1934_v19 = vsel %vm1603_vm7, %v2748_v13, 0.0  ;;  %v1977_v22 = vpack.c.bf16 %v2748_v13, %v2748_v13  ;;  %v2750_v29 = vpop.eup %2749 }
 0x568   : > { %1935 = vadd.xlane.f32.xlu1 %v1934_v19  ;;  %v1923_v17 = vmul.f32 %v2750_v29, %v1919_v7 }
 0x569   : > { %2605 = vmatmul.mubr.msk.bf16.vlgmr.msra.gmra.mrb[12].mxu1 %vm1603_vm7, %v1977_v22 }
 0x56c   : > { %1926 = vadd.xlane.f32.xlu1 %v1925_v26 }
 0x56e   : > { %v2752_v8 = vpop.eup %2751 }
 0x56f   : > { %v2754_v6 = vpop.eup %2753  ;;  %v1922_v18 = vmul.f32 %v2752_v8, %v1918_v59 }
 0x570   : > { %v1924_v31 = vmul.f32 %v2754_v6, %v1920_v28  ;;  %v2756_v33 = vpop.eup %2755 }
 0x571   : > { %v1921_v3 = vmul.f32 %v2756_v33, %v1917_v35 }
 0x57a   : > { %1962 = vperm.xlu0 %2727, %v2750_v29   ;;  %v1946_v29 = vld [vmem:[#allocation4] sm:$0xff] }
 0x57d   : > { %1957 = vperm.xlu1 %2728, %v2752_v8  }
 0x581   : > { %1967 = vperm.xlu1 %2728, %v2754_v6  }
 0x5ed   : > { %v1930_v5 = vpop.xlane.xlu1 %1929 }
 0x5ee   : > { %v1938_v12 = vadd.f32 %v1930_v5, %v1922_v18 }
 0x5f0   : > { %1943 = vst.msk [vmem:[#allocation3 + $0x8] sm:$0xff] %vm1941_vm9, %v1938_v12 }
 0x5f1   : > { %v1933_v23 = vpop.xlane.xlu0 %1932 }
 0x5f2   : > { %v1939_v14 = vadd.f32 %v1933_v23, %v1923_v17 }
 0x5f4   : > { %1944 = vst.msk [vmem:[#allocation3 + $0x10] sm:$0xff] %vm1941_vm9, %v1939_v14 }
 0x5f5   : > { %v1936_v34 = vpop.xlane.xlu1 %1935 }
 0x5f6   : > { %v1940_v63 = vadd.f32 %v1936_v34, %v1924_v31 }
 0x5f7   : > { %v2208_v2 = vld [vmem:[#allocation3 + $0x8] sm:$0xff] }
 0x5f8   : > { %1945 = vst.msk [vmem:[#allocation3 + $0x18] sm:$0xff] %vm1941_vm9, %v1940_v63  ;;  %2757 = vrcp.f32 %v2208_v2 }
 0x5f9   : > { %v1927_v37 = vpop.xlane.xlu1 %1926  ;;  %v1963_v56 = vpop.permute.xlu0 %1962 }
 0x5fa   : > { %v1937_v38 = vadd.f32 %v1927_v37, %v1921_v3  ;;  %v1972_v62 = vmul.f32 %v1963_v56, %v1948_v55 }
 0x5fb   : > { %v2209_v39 = vld [vmem:[#allocation3 + $0x10] sm:$0xff] }
 0x5fc   : > { %1942 = vst.msk [vmem:[#allocation3] sm:$0xff] %vm1941_vm9, %v1937_v38  ;;  %2759 = vrcp.f32 %v2209_v39 }
 0x5fd   : > { %v1958_v46 = vpop.permute.xlu1 %1957 }
 0x5fe   : > { %v1971_v51 = vmul.f32 %v1958_v46, %v1947_v45 }
 0x5ff   : > { %v2210_v32 = vld [vmem:[#allocation3 + $0x18] sm:$0xff] }
 0x600   : > { %2761 = vrcp.f32 %v2210_v32 }
 0x601   : > { %v1968_v9 = vpop.permute.xlu1 %1967 }
 0x602   : > { %v2758_v40 = vpop.eup %2757  ;;  %v1973_v16 = vmul.f32 %v1968_v9, %v1949_v4 }
 0x603   : > { %2229 = vperm.xlu1 %2728, %v2758_v40   ;;  %v2207_v41 = vld [vmem:[#allocation3] sm:$0xff] }
 0x604   : > { %2763 = vrcp.f32 %v2207_v41 }
 0x606   : > { %v2760_v42 = vpop.eup %2759 }
 0x607   : > { %2246 = vperm.xlu1 %2728, %v2760_v42  }
 0x60a   : > { %v2762_v36 = vpop.eup %2761 }
 0x60b   : > { %1952 = vperm.xlu1 %2728, %v2756_v33   ;;  %2263 = vperm.xlu0 %2727, %v2762_v36  }
 0x60e   : > { %v2764_v48 = vpop.eup %2763 }
 0x60f   : > { %2218 = vperm.xlu0 %2727, %v2764_v48  }
 0x630   : > { %v2027_v25 = vpop.f32.mrb[8].mxu0 }
 0x631   : > { %v2588_v47 = vpop.f32.mrb[9].mxu0 }
 0x632   : > { %v2030_v49 = vpop.f32.mrb[10].mxu0 }
 0x633   : > { %v2589_v52 = vpop.f32.mrb[11].mxu0 }
 0x634   : > { %v2081_v57 = vpop.f32.mrb[8].mxu1 }
 0x635   : > { %v2196_v58 = vadd.f32 %v2081_v57, %v1971_v51  ;;  %v2594_v60 = vpop.f32.mrb[9].mxu1 }
 0x636   : > { %v2084_v61 = vpop.f32.mrb[10].mxu1 }
 0x637   : > { %2200 = vst.msk [vmem:[#allocation4 + $0x8] sm:$0xff] %vm1603_vm7, %v2196_v58  ;;  %v2595_v1 = vpop.f32.mrb[11].mxu1 }
 0x638   : > { %v2135_v10 = vpop.f32.mrb[12].mxu0 }
 0x639   : > { %v2197_v30 = vadd.f32 %v2135_v10, %v1972_v62  ;;  %v2600_v11 = vpop.f32.mrb[13].mxu0 }
 0x63a   : > { %v2138_v44 = vpop.f32.mrb[14].mxu0 }
 0x63b   : > { %2201 = vst.msk [vmem:[#allocation4 + $0x10] sm:$0xff] %vm1603_vm7, %v2197_v30  ;;  %v2601_v21 = vpop.f32.mrb[15].mxu0 }
 0x63c   : > { %v2189_v43 = vpop.f32.mrb[12].mxu1 }
 0x63d   : > { %v2198_v0 = vadd.f32 %v2189_v43, %v1973_v16  ;;  %v2606_v50 = vpop.f32.mrb[13].mxu1 }
 0x63e   : > { %v2192_v53 = vpop.f32.mrb[14].mxu1  ;;  %v2226_v13 = vld [vmem:[#allocation4 + $0x8] sm:$0xff] }
 0x63f   : > { %2202 = vst.msk [vmem:[#allocation4 + $0x18] sm:$0xff] %vm1603_vm7, %v2198_v0  ;;  %v2607_v20 = vpop.f32.mrb[15].mxu1 }
 0x642   : > { %v2243_v54 = vld [vmem:[#allocation4 + $0x10] sm:$0xff] }
 0x646   : > { %v2260_v15 = vld [vmem:[#allocation4 + $0x18] sm:$0xff] }
 0x682   : > { %v2230_v19 = vpop.permute.xlu1 %2229 }
 0x683   : > { %v2232_v22 = vmul.f32 %v2230_v19, %v2226_v13 }
 0x685   : > { %v2477_v24 = vpack.c.bf16 %v2232_v22, %v2232_v22 }
 0x686   : > { %v2247_v26 = vpop.permute.xlu1 %2246 }
 0x687   : > { %v2249_v27 = vmul.f32 %v2247_v26, %v2243_v54  ;;  %2237 = vrot.lane.b32.xlu1 %v2477_v24, %s2871_s28 }
 0x689   : > { %v2478_v8 = vpack.c.bf16 %v2249_v27, %v2249_v27 }
 0x68a   : > { %v2264_v6 = vpop.permute.xlu0 %2263  ;;  %v1953_v59 = vpop.permute.xlu1 %1952 }
 0x68b   : > { %v2266_v18 = vmul.f32 %v2264_v6, %v2260_v15  ;;  %v1970_v5 = vmul.f32 %v1953_v59, %v1946_v29  ;;  %2254 = vrot.lane.b32.xlu0 %v2478_v8, %s2872_s10 }
 0x68d   : > { %v2479_v7 = vpack.c.bf16 %v2266_v18, %v2266_v18  ;;  %v2195_v12 = vadd.f32 %v2027_v25, %v1970_v5 }
 0x68e   : > { %v2219_v17 = vpop.permute.xlu0 %2218 }
 0x68f   : > { %2199 = vst.msk [vmem:[#allocation4] sm:$0xff] %vm1603_vm7, %v2195_v12  ;;  %2271 = vrot.lane.b32.xlu1 %v2479_v7, %s2873_s7 }
 0x696   : > { %v2215_v23 = vld [vmem:[#allocation4] sm:$0xff] }
 0x697   : > { %v2221_v28 = vmul.f32 %v2219_v17, %v2215_v23 }
 0x699   : > { %v2222_v14 = vpack.c.bf16 %v2221_v28, %v2221_v28 }
 0x69b   : > { %2224 = vst.msk [vmem:[%s3029_s24] sm:$0xf] %vm2223_vm11, %v2222_v14 }
 0x6f9   : > { %v2238_v31 = vpop.permute.xlu1 %2237 }
 0x6fa   : > { %2241 = vst.msk [vmem:[%s3029_s24] sm:$0xf] %vm2240_vm12, %v2238_v31 }
 0x6fd   : > { %v2255_v33 = vpop.permute.xlu0 %2254 }
 0x6fe   : > { %2258 = vst.msk [vmem:[%s3029_s24] sm:$0xf] %vm2257_vm13, %v2255_v33 }
 0x701   : > { %v2272_v34 = vpop.permute.xlu1 %2271 }
 0x702   : > { %2275 = vst.msk [vmem:[%s3029_s24] sm:$0xf] %vm2274_vm14, %v2272_v34 }
 0x703 PF: > { %s17_s0 = sadd.s32 1, %s2859_s0   ;;  %s3416_s22 = smov %s2831_s23 }
 0x704   : > { %p14_p4 = scmp.ge.s32.totalorder %s17_s0, 4   ;;  %s3417_s23 = smov %s2989_s14 }
 0x705   : > { %s3418_s24 = smov %s2839_s25  ;;  %s3419_s25 = smov %s2986_s13 }
 0x706   : > { %s3420_s26 = smov %s2847_s27  ;;  %s3421_s27 = smov %s2977_s9 }
 0x707   : > { %s3422_s28 = smov %s2855_s29  ;;  %s3423_s29 = smov %s3425_s1 }
 0x708   :  { %16 = sbr.rel (!%p14_p4) target bundleno = 8 (0x8), region = 221 }

</bundles_post_ra>
